<compile_context>
chip_gen: v6e
topology: v6e:2x2x1
jax: 0.10.0
libtpu: 0.0.40
codegen_flags: <defaults>
</compile_context>

<pallas_src>
import functools
import math

import jax
import jax.numpy as jnp
from jax.experimental import pallas as pl
from jax.experimental.pallas import tpu as pltpu


def _round_up(x, m):
    return (x + m - 1) // m * m


# ---------------------------------------------------------------------------
# Kernel 1: fused Conv1d(k=3, pad=1) + bias + ReLU + MaxPool1d(2, 2)
# Grid: (B,). Each step processes one batch element's full (L, Cin) slab — this
# trivially fits VMEM for 1-D signal lengths (L * C * 4 bytes).
# ---------------------------------------------------------------------------
_HALO = 8  # aligned staging offset inside the padded VMEM slab


def _conv_relu_pool_kernel(x_ref, w_ref, b_ref, o_ref, xbuf, ybuf):
    # x_ref: (1, L, Cin) f32   w_ref: (3, Cin, Cout) bf16   b_ref: (1, Cout) f32
    # o_ref: (1, L//2, Cout) f32
    # xbuf : (L + 2*_HALO, Cin) f32 scratch (zero-padded halo for the k=3 taps)
    # ybuf : (L, Cout) f32 scratch (pre-pool conv output)
    l = x_ref.shape[1]
    lh = o_ref.shape[1]

    x = x_ref[0]                                       # (L, Cin) f32
    xbuf[...] = jnp.zeros_like(xbuf)
    xbuf[pl.ds(_HALO, l), :] = x

    xm = xbuf[pl.ds(_HALO - 1, l), :]                  # x[l-1], zero at l == 0
    xp = xbuf[pl.ds(_HALO + 1, l), :]                  # x[l+1], zero at l == L-1

    # 3 taps -> 3 small MXU matmuls; bf16 operands, f32 accumulate.
    y = jnp.dot(xm.astype(jnp.bfloat16), w_ref[0],
                preferred_element_type=jnp.float32)
    y += jnp.dot(x.astype(jnp.bfloat16), w_ref[1],
                 preferred_element_type=jnp.float32)
    y += jnp.dot(xp.astype(jnp.bfloat16), w_ref[2],
                 preferred_element_type=jnp.float32)
    y = jnp.maximum(y + b_ref[...], 0.0)               # bias + ReLU

    # MaxPool1d(kernel=2, stride=2) fused in-kernel: strided VMEM reads, no HBM trip.
    ybuf[...] = y
    even = ybuf[pl.ds(0, lh, stride=2), :]
    odd = ybuf[pl.ds(1, lh, stride=2), :]
    o_ref[0] = jnp.maximum(even, odd)


def conv1d_relu_pool(x_nlc, w, b):
    """x_nlc: (B, L, Cin) f32.  w: (Cout, Cin, 3) torch layout.  b: (Cout,)."""
    bsz, l, cin = x_nlc.shape
    cout = w.shape[0]
    lh = l // 2

    # Keep the contracting (channel) dim at least 8 wide (only pads layer 1's Cin=1).
    cin_p = max(8, _round_up(cin, 8))
    if cin_p != cin:
        x_nlc = jnp.pad(x_nlc, ((0, 0), (0, 0), (0, cin_p - cin)))
        w = jnp.pad(w, ((0, 0), (0, cin_p - cin), (0, 0)))

    wstk = jnp.transpose(w, (2, 1, 0)).astype(jnp.bfloat16)   # (3, Cin_p, Cout)
    bias = b.reshape(1, cout).astype(jnp.float32)

    return pl.pallas_call(
        _conv_relu_pool_kernel,
        out_shape=jax.ShapeDtypeStruct((bsz, lh, cout), jnp.float32),
        grid=(bsz,),
        in_specs=[
            pl.BlockSpec((1, l, cin_p), lambda i: (i, 0, 0)),
            pl.BlockSpec((3, cin_p, cout), lambda i: (0, 0, 0)),
            pl.BlockSpec((1, cout), lambda i: (0, 0)),
        ],
        out_specs=pl.BlockSpec((1, lh, cout), lambda i: (i, 0, 0)),
        scratch_shapes=[
            pltpu.VMEM((l + 2 * _HALO, cin_p), jnp.float32),
            pltpu.VMEM((l, cout), jnp.float32),
        ],
        compiler_params=pltpu.CompilerParams(
            dimension_semantics=("parallel",),
            vmem_limit_bytes=32 * 1024 * 1024,
        ),
    )(x_nlc, wstk, bias)


# ---------------------------------------------------------------------------
# Kernel 2: tiled fused Linear: act((A @ W) + b)
# Grid: (M/TM, N/TN, K/TK) with a f32 VMEM accumulator and pl.when on the K axis.
# ---------------------------------------------------------------------------
def _linear_kernel(a_ref, w_ref, b_ref, o_ref, acc_ref, *, act):
    k = pl.program_id(2)

    @pl.when(k == 0)
    def _():
        acc_ref[...] = jnp.zeros_like(acc_ref)

    acc_ref[...] += jnp.dot(a_ref[...], w_ref[...],
                            preferred_element_type=jnp.float32)

    @pl.when(k == pl.num_programs(2) - 1)
    def _():
        y = acc_ref[...] + b_ref[...]
        if act == "relu":
            y = jnp.maximum(y, 0.0)
        elif act == "sigmoid":
            y = jax.nn.sigmoid(y)
        o_ref[...] = y.astype(o_ref.dtype)


def fused_linear(a, w, bias, act):
    """act((a @ w) + bias). a: (M, K) f32, w: (K, N) f32, bias: (N,) f32."""
    m, k = a.shape
    k2, n = w.shape
    assert k == k2

    tn = 128
    tm = 256
    mp = _round_up(m, 8)
    if mp <= tm:
        tm = mp
    else:
        mp = _round_up(mp, tm)
    np_ = _round_up(n, tn)
    tk = 512 if k > 512 else _round_up(k, 128)
    kp = _round_up(k, tk)

    a_p = jnp.pad(a, ((0, mp - m), (0, kp - k))).astype(jnp.bfloat16)
    w_p = jnp.pad(w, ((0, kp - k), (0, np_ - n))).astype(jnp.bfloat16)
    b_p = jnp.pad(bias.reshape(1, -1), ((0, 0), (0, np_ - n))).astype(jnp.float32)

    grid = (mp // tm, np_ // tn, kp // tk)
    out = pl.pallas_call(
        functools.partial(_linear_kernel, act=act),
        out_shape=jax.ShapeDtypeStruct((mp, np_), jnp.float32),
        grid=grid,
        in_specs=[
            pl.BlockSpec((tm, tk), lambda i, j, kk: (i, kk)),
            pl.BlockSpec((tk, tn), lambda i, j, kk: (kk, j)),
            pl.BlockSpec((1, tn), lambda i, j, kk: (0, j)),
        ],
        out_specs=pl.BlockSpec((tm, tn), lambda i, j, kk: (i, j)),
        scratch_shapes=[pltpu.VMEM((tm, tn), jnp.float32)],
        compiler_params=pltpu.CompilerParams(
            dimension_semantics=("parallel", "parallel", "arbitrary"),
            vmem_limit_bytes=32 * 1024 * 1024,
        ),
        cost_estimate=pl.CostEstimate(
            flops=2 * mp * kp * np_,
            bytes_accessed=2 * (mp * kp + kp * np_) + 4 * mp * np_,
            transcendentals=mp * np_ if act == "sigmoid" else 0,
        ),
    )(a_p, w_p, b_p)
    return out[:m, :n]


# ---------------------------------------------------------------------------
# Parameters (deterministic, PyTorch-default-style uniform init)
# ---------------------------------------------------------------------------
def _uniform(key, shape, bound):
    return jax.random.uniform(key, shape, jnp.float32, -bound, bound)


def init_cnn1d_params(key, input_channels=1, num_classes=1, sig_len=128):
    ks = jax.random.split(key, 10)
    fc1_in = 64 * sig_len // 8

    def conv(kw, kb, cout, cin, ksz=3):
        bound = 1.0 / math.sqrt(cin * ksz)
        return _uniform(kw, (cout, cin, ksz), bound), _uniform(kb, (cout,), bound)

    w1, b1 = conv(ks[0], ks[1], 16, input_channels)
    w2, b2 = conv(ks[2], ks[3], 32, 16)
    w3, b3 = conv(ks[4], ks[5], 64, 32)
    fb1 = 1.0 / math.sqrt(fc1_in)
    fb2 = 1.0 / math.sqrt(128)
    return dict(
        w1=w1, b1=b1, w2=w2, b2=b2, w3=w3, b3=b3,
        fc1_w=_uniform(ks[6], (128, fc1_in), fb1),
        fc1_b=_uniform(ks[7], (128,), fb1),
        fc2_w=_uniform(ks[8], (num_classes, 128), fb2),
        fc2_b=_uniform(ks[9], (num_classes,), fb2),
    )


# ---------------------------------------------------------------------------
# Forward pass (matches CNN1D.forward semantics, inference mode)
# ---------------------------------------------------------------------------
def cnn1d_forward(params, x_ncl):
    # NCL -> NLC (channels on the lane dimension).
    x = jnp.transpose(x_ncl, (0, 2, 1)).astype(jnp.float32)
    x = conv1d_relu_pool(x, params["w1"], params["b1"])   # (B, L/2, 16)
    x = conv1d_relu_pool(x, params["w2"], params["b2"])   # (B, L/4, 32)
    x = conv1d_relu_pool(x, params["w3"], params["b3"])   # (B, L/8, 64)

    # Flatten in torch NCL order: (B, C, L/8) -> (B, C * L/8).
    bsz = x.shape[0]
    feat = jnp.transpose(x, (0, 2, 1)).reshape(bsz, -1)

    h = fused_linear(feat, params["fc1_w"].T, params["fc1_b"], act="relu")
    # Dropout(p=0.5) is identity in eval/inference mode.
    # TODO(synk): training-mode dropout (pltpu.prng_random_bits mask) not implemented.
    return fused_linear(h, params["fc2_w"].T, params["fc2_b"], act="sigmoid")


if __name__ == "__main__":
    key = jax.random.PRNGKey(0)
    k_param, k_input = jax.random.split(key)

    batch, in_channels, num_classes, sig_len = 2, 1, 1, 128
    params = init_cnn1d_params(k_param, in_channels, num_classes, sig_len)
    x = jax.random.normal(k_input, (batch, in_channels, sig_len), jnp.float32)

    fwd = jax.jit(cnn1d_forward)
    out = jax.block_until_ready(fwd(params, x))

    assert out.shape == (batch, num_classes)
    assert bool(jnp.all(jnp.isfinite(out)))
    assert bool(jnp.all((out >= 0.0) & (out <= 1.0)))  # sigmoid output range
    print("KERNEL_OK")
</pallas_src>

<mosaic_0001>
module attributes {stable_mosaic.version = 11 : i64} {
  func.func @_conv_relu_pool_kernel(%arg0: i32, %arg1: memref<1x64x16xf32, #tpu.memory_space<vmem>>, %arg2: memref<3x16x32xbf16, #tpu.memory_space<vmem>>, %arg3: memref<1x32xf32, #tpu.memory_space<vmem>>, %arg4: memref<1x32x32xf32, #tpu.memory_space<vmem>>, %arg5: memref<80x16xf32, #tpu.memory_space<vmem>>, %arg6: memref<64x32xf32, #tpu.memory_space<vmem>>) attributes {dimension_semantics = [#tpu.dimension_semantics<parallel>], iteration_bounds = array<i64: 2>, scalar_prefetch = 0 : i64, scratch_operands = 2 : i64, tpu.core_type = #tpu.core_type<tc>, window_params = [{transform_indices = @transform_0, window_bounds = array<i64: 1, 64, 16>}, {pipeline_mode = #tpu.pipeline_mode<synchronous>, transform_indices = @transform_1, window_bounds = array<i64: 3, 16, 32>}, {pipeline_mode = #tpu.pipeline_mode<synchronous>, transform_indices = @transform_2, window_bounds = array<i64: 1, 32>}, {transform_indices = @transform_3, window_bounds = array<i64: 1, 32, 32>}]} {
    %c0 = arith.constant 0 : index
    %c0_0 = arith.constant 0 : index
    %c0_1 = arith.constant 0 : index
    %0 = vector.load %arg1[%c0, %c0_0, %c0_1] : memref<1x64x16xf32, #tpu.memory_space<vmem>>, vector<1x64x16xf32>
    %1 = vector.shape_cast %0 : vector<1x64x16xf32> to vector<64x16xf32>
    %cst = arith.constant 0.000000e+00 : f32
    %2 = vector.broadcast %cst : f32 to vector<80x16xf32>
    %c0_2 = arith.constant 0 : index
    %c0_3 = arith.constant 0 : index
    %3 = vector.load %arg5[%c0_2, %c0_3] : memref<80x16xf32, #tpu.memory_space<vmem>>, vector<80x16xf32>
    tpu.vector_store %arg5[%c0_2, %c0_3], %2 {strides = array<i32>} : memref<80x16xf32, #tpu.memory_space<vmem>>, vector<80x16xf32>,
    %c8 = arith.constant 8 : index
    %c0_4 = arith.constant 0 : index
    %4 = vector.load %arg5[%c8, %c0_4] : memref<80x16xf32, #tpu.memory_space<vmem>>, vector<64x16xf32>
    tpu.vector_store %arg5[%c8, %c0_4], %1 {strides = array<i32>} : memref<80x16xf32, #tpu.memory_space<vmem>>, vector<64x16xf32>,
    %c7 = arith.constant 7 : index
    %c0_5 = arith.constant 0 : index
    %5 = vector.load %arg5[%c7, %c0_5] : memref<80x16xf32, #tpu.memory_space<vmem>>, vector<64x16xf32>
    %c9 = arith.constant 9 : index
    %c0_6 = arith.constant 0 : index
    %6 = vector.load %arg5[%c9, %c0_6] : memref<80x16xf32, #tpu.memory_space<vmem>>, vector<64x16xf32>
    %7 = arith.truncf %5 : vector<64x16xf32> to vector<64x16xbf16>
    %c0_7 = arith.constant 0 : index
    %c0_8 = arith.constant 0 : index
    %c0_9 = arith.constant 0 : index
    %8 = vector.load %arg2[%c0_7, %c0_8, %c0_9] : memref<3x16x32xbf16, #tpu.memory_space<vmem>>, vector<1x16x32xbf16>
    %9 = vector.shape_cast %8 : vector<1x16x32xbf16> to vector<16x32xbf16>
    %cst_10 = arith.constant dense<0.000000e+00> : vector<64x32xf32>
    %10 = tpu.matmul %7, %9, %cst_10 {dimension_numbers = #tpu.dot_dimension_numbers<[1], [0], [0], [1], [0, 0, 1, 1], [], []>} : vector<64x16xbf16>, vector<16x32xbf16>, vector<64x32xf32> -> vector<64x32xf32>
    %11 = arith.truncf %1 : vector<64x16xf32> to vector<64x16xbf16>
    %c1 = arith.constant 1 : index
    %c0_11 = arith.constant 0 : index
    %c0_12 = arith.constant 0 : index
    %12 = vector.load %arg2[%c1, %c0_11, %c0_12] : memref<3x16x32xbf16, #tpu.memory_space<vmem>>, vector<1x16x32xbf16>
    %13 = vector.shape_cast %12 : vector<1x16x32xbf16> to vector<16x32xbf16>
    %cst_13 = arith.constant dense<0.000000e+00> : vector<64x32xf32>
    %14 = tpu.matmul %11, %13, %cst_13 {dimension_numbers = #tpu.dot_dimension_numbers<[1], [0], [0], [1], [0, 0, 1, 1], [], []>} : vector<64x16xbf16>, vector<16x32xbf16>, vector<64x32xf32> -> vector<64x32xf32>
    %15 = arith.addf %10, %14 : vector<64x32xf32>
    %16 = arith.truncf %6 : vector<64x16xf32> to vector<64x16xbf16>
    %c2 = arith.constant 2 : index
    %c0_14 = arith.constant 0 : index
    %c0_15 = arith.constant 0 : index
    %17 = vector.load %arg2[%c2, %c0_14, %c0_15] : memref<3x16x32xbf16, #tpu.memory_space<vmem>>, vector<1x16x32xbf16>
    %18 = vector.shape_cast %17 : vector<1x16x32xbf16> to vector<16x32xbf16>
    %cst_16 = arith.constant dense<0.000000e+00> : vector<64x32xf32>
    %19 = tpu.matmul %16, %18, %cst_16 {dimension_numbers = #tpu.dot_dimension_numbers<[1], [0], [0], [1], [0, 0, 1, 1], [], []>} : vector<64x16xbf16>, vector<16x32xbf16>, vector<64x32xf32> -> vector<64x32xf32>
    %20 = arith.addf %15, %19 : vector<64x32xf32>
    %c0_17 = arith.constant 0 : index
    %c0_18 = arith.constant 0 : index
    %21 = vector.load %arg3[%c0_17, %c0_18] : memref<1x32xf32, #tpu.memory_space<vmem>>, vector<1x32xf32>
    %22 = vector.broadcast %21 : vector<1x32xf32> to vector<64x32xf32>
    %23 = arith.addf %20, %22 : vector<64x32xf32>
    %cst_19 = arith.constant 0.000000e+00 : f32
    %24 = vector.broadcast %cst_19 : f32 to vector<64x32xf32>
    %25 = arith.maximumf %23, %24 : vector<64x32xf32>
    %c0_20 = arith.constant 0 : index
    %c0_21 = arith.constant 0 : index
    %26 = vector.load %arg6[%c0_20, %c0_21] : memref<64x32xf32, #tpu.memory_space<vmem>>, vector<64x32xf32>
    tpu.vector_store %arg6[%c0_20, %c0_21], %25 {strides = array<i32>} : memref<64x32xf32, #tpu.memory_space<vmem>>, vector<64x32xf32>,
    %c0_22 = arith.constant 0 : index
    %c0_23 = arith.constant 0 : index
    %27 = tpu.strided_load %arg6[%c0_22, %c0_23] {strides = array<i32: 2, 1>} : memref<64x32xf32, #tpu.memory_space<vmem>>, vector<32x32xf32>
    %c1_24 = arith.constant 1 : index
    %c0_25 = arith.constant 0 : index
    %28 = tpu.strided_load %arg6[%c1_24, %c0_25] {strides = array<i32: 2, 1>} : memref<64x32xf32, #tpu.memory_space<vmem>>, vector<32x32xf32>
    %29 = arith.maximumf %27, %28 : vector<32x32xf32>
    %c0_26 = arith.constant 0 : index
    %c0_27 = arith.constant 0 : index
    %c0_28 = arith.constant 0 : index
    %30 = vector.load %arg4[%c0_26, %c0_27, %c0_28] : memref<1x32x32xf32, #tpu.memory_space<vmem>>, vector<1x32x32xf32>
    %31 = vector.shape_cast %30 : vector<1x32x32xf32> to vector<32x32xf32>
    %32 = vector.shape_cast %29 : vector<32x32xf32> to vector<1x32x32xf32>
    tpu.vector_store %arg4[%c0_26, %c0_27, %c0_28], %32 {strides = array<i32>} : memref<1x32x32xf32, #tpu.memory_space<vmem>>, vector<1x32x32xf32>,
    return
  }
  func.func @transform_0(%arg0: i32) -> (i32, i32, i32) {
    %c0_i32 = arith.constant 0 : i32
    %c0_i32_0 = arith.constant 0 : i32
    %c0_i32_1 = arith.constant 0 : i32
    return %arg0, %c0_i32, %c0_i32_0 : i32, i32, i32
  }
  func.func @transform_1(%arg0: i32) -> (i32, i32, i32) {
    %c0_i32 = arith.constant 0 : i32
    %c0_i32_0 = arith.constant 0 : i32
    %c0_i32_1 = arith.constant 0 : i32
    %c0_i32_2 = arith.constant 0 : i32
    return %c0_i32, %c0_i32_0, %c0_i32_1 : i32, i32, i32
  }
  func.func @transform_2(%arg0: i32) -> (i32, i32) {
    %c0_i32 = arith.constant 0 : i32
    %c0_i32_0 = arith.constant 0 : i32
    %c0_i32_1 = arith.constant 0 : i32
    return %c0_i32, %c0_i32_0 : i32, i32
  }
  func.func @transform_3(%arg0: i32) -> (i32, i32, i32) {
    %c0_i32 = arith.constant 0 : i32
    %c0_i32_0 = arith.constant 0 : i32
    %c0_i32_1 = arith.constant 0 : i32
    return %arg0, %c0_i32, %c0_i32_0 : i32, i32, i32
  }
}

module attributes {stable_mosaic.version = 11 : i64} {
  func.func @_conv_relu_pool_kernel(%arg0: i32, %arg1: memref<1x128x8xf32, #tpu.memory_space<vmem>>, %arg2: memref<3x8x16xbf16, #tpu.memory_space<vmem>>, %arg3: memref<1x16xf32, #tpu.memory_space<vmem>>, %arg4: memref<1x64x16xf32, #tpu.memory_space<vmem>>, %arg5: memref<144x8xf32, #tpu.memory_space<vmem>>, %arg6: memref<128x16xf32, #tpu.memory_space<vmem>>) attributes {dimension_semantics = [#tpu.dimension_semantics<parallel>], iteration_bounds = array<i64: 2>, scalar_prefetch = 0 : i64, scratch_operands = 2 : i64, tpu.core_type = #tpu.core_type<tc>, window_params = [{transform_indices = @transform_0, window_bounds = array<i64: 1, 128, 8>}, {pipeline_mode = #tpu.pipeline_mode<synchronous>, transform_indices = @transform_1, window_bounds = array<i64: 3, 8, 16>}, {pipeline_mode = #tpu.pipeline_mode<synchronous>, transform_indices = @transform_2, window_bounds = array<i64: 1, 16>}, {transform_indices = @transform_3, window_bounds = array<i64: 1, 64, 16>}]} {
    %c0 = arith.constant 0 : index
    %c0_0 = arith.constant 0 : index
    %c0_1 = arith.constant 0 : index
    %0 = vector.load %arg1[%c0, %c0_0, %c0_1] : memref<1x128x8xf32, #tpu.memory_space<vmem>>, vector<1x128x8xf32>
    %1 = vector.shape_cast %0 : vector<1x128x8xf32> to vector<128x8xf32>
    %cst = arith.constant 0.000000e+00 : f32
    %2 = vector.broadcast %cst : f32 to vector<144x8xf32>
    %c0_2 = arith.constant 0 : index
    %c0_3 = arith.constant 0 : index
    %3 = vector.load %arg5[%c0_2, %c0_3] : memref<144x8xf32, #tpu.memory_space<vmem>>, vector<144x8xf32>
    tpu.vector_store %arg5[%c0_2, %c0_3], %2 {strides = array<i32>} : memref<144x8xf32, #tpu.memory_space<vmem>>, vector<144x8xf32>,
    %c8 = arith.constant 8 : index
    %c0_4 = arith.constant 0 : index
    %4 = vector.load %arg5[%c8, %c0_4] : memref<144x8xf32, #tpu.memory_space<vmem>>, vector<128x8xf32>
    tpu.vector_store %arg5[%c8, %c0_4], %1 {strides = array<i32>} : memref<144x8xf32, #tpu.memory_space<vmem>>, vector<128x8xf32>,
    %c7 = arith.constant 7 : index
    %c0_5 = arith.constant 0 : index
    %5 = vector.load %arg5[%c7, %c0_5] : memref<144x8xf32, #tpu.memory_space<vmem>>, vector<128x8xf32>
    %c9 = arith.constant 9 : index
    %c0_6 = arith.constant 0 : index
    %6 = vector.load %arg5[%c9, %c0_6] : memref<144x8xf32, #tpu.memory_space<vmem>>, vector<128x8xf32>
    %7 = arith.truncf %5 : vector<128x8xf32> to vector<128x8xbf16>
    %c0_7 = arith.constant 0 : index
    %c0_8 = arith.constant 0 : index
    %c0_9 = arith.constant 0 : index
    %8 = vector.load %arg2[%c0_7, %c0_8, %c0_9] : memref<3x8x16xbf16, #tpu.memory_space<vmem>>, vector<1x8x16xbf16>
    %9 = vector.shape_cast %8 : vector<1x8x16xbf16> to vector<8x16xbf16>
    %cst_10 = arith.constant dense<0.000000e+00> : vector<128x16xf32>
    %10 = tpu.matmul %7, %9, %cst_10 {dimension_numbers = #tpu.dot_dimension_numbers<[1], [0], [0], [1], [0, 0, 1, 1], [], []>} : vector<128x8xbf16>, vector<8x16xbf16>, vector<128x16xf32> -> vector<128x16xf32>
    %11 = arith.truncf %1 : vector<128x8xf32> to vector<128x8xbf16>
    %c1 = arith.constant 1 : index
    %c0_11 = arith.constant 0 : index
    %c0_12 = arith.constant 0 : index
    %12 = vector.load %arg2[%c1, %c0_11, %c0_12] : memref<3x8x16xbf16, #tpu.memory_space<vmem>>, vector<1x8x16xbf16>
    %13 = vector.shape_cast %12 : vector<1x8x16xbf16> to vector<8x16xbf16>
    %cst_13 = arith.constant dense<0.000000e+00> : vector<128x16xf32>
    %14 = tpu.matmul %11, %13, %cst_13 {dimension_numbers = #tpu.dot_dimension_numbers<[1], [0], [0], [1], [0, 0, 1, 1], [], []>} : vector<128x8xbf16>, vector<8x16xbf16>, vector<128x16xf32> -> vector<128x16xf32>
    %15 = arith.addf %10, %14 : vector<128x16xf32>
    %16 = arith.truncf %6 : vector<128x8xf32> to vector<128x8xbf16>
    %c2 = arith.constant 2 : index
    %c0_14 = arith.constant 0 : index
    %c0_15 = arith.constant 0 : index
    %17 = vector.load %arg2[%c2, %c0_14, %c0_15] : memref<3x8x16xbf16, #tpu.memory_space<vmem>>, vector<1x8x16xbf16>
    %18 = vector.shape_cast %17 : vector<1x8x16xbf16> to vector<8x16xbf16>
    %cst_16 = arith.constant dense<0.000000e+00> : vector<128x16xf32>
    %19 = tpu.matmul %16, %18, %cst_16 {dimension_numbers = #tpu.dot_dimension_numbers<[1], [0], [0], [1], [0, 0, 1, 1], [], []>} : vector<128x8xbf16>, vector<8x16xbf16>, vector<128x16xf32> -> vector<128x16xf32>
    %20 = arith.addf %15, %19 : vector<128x16xf32>
    %c0_17 = arith.constant 0 : index
    %c0_18 = arith.constant 0 : index
    %21 = vector.load %arg3[%c0_17, %c0_18] : memref<1x16xf32, #tpu.memory_space<vmem>>, vector<1x16xf32>
    %22 = vector.broadcast %21 : vector<1x16xf32> to vector<128x16xf32>
    %23 = arith.addf %20, %22 : vector<128x16xf32>
    %cst_19 = arith.constant 0.000000e+00 : f32
    %24 = vector.broadcast %cst_19 : f32 to vector<128x16xf32>
    %25 = arith.maximumf %23, %24 : vector<128x16xf32>
    %c0_20 = arith.constant 0 : index
    %c0_21 = arith.constant 0 : index
    %26 = vector.load %arg6[%c0_20, %c0_21] : memref<128x16xf32, #tpu.memory_space<vmem>>, vector<128x16xf32>
    tpu.vector_store %arg6[%c0_20, %c0_21], %25 {strides = array<i32>} : memref<128x16xf32, #tpu.memory_space<vmem>>, vector<128x16xf32>,
    %c0_22 = arith.constant 0 : index
    %c0_23 = arith.constant 0 : index
    %27 = tpu.strided_load %arg6[%c0_22, %c0_23] {strides = array<i32: 2, 1>} : memref<128x16xf32, #tpu.memory_space<vmem>>, vector<64x16xf32>
    %c1_24 = arith.constant 1 : index
    %c0_25 = arith.constant 0 : index
    %28 = tpu.strided_load %arg6[%c1_24, %c0_25] {strides = array<i32: 2, 1>} : memref<128x16xf32, #tpu.memory_space<vmem>>, vector<64x16xf32>
    %29 = arith.maximumf %27, %28 : vector<64x16xf32>
    %c0_26 = arith.constant 0 : index
    %c0_27 = arith.constant 0 : index
    %c0_28 = arith.constant 0 : index
    %30 = vector.load %arg4[%c0_26, %c0_27, %c0_28] : memref<1x64x16xf32, #tpu.memory_space<vmem>>, vector<1x64x16xf32>
    %31 = vector.shape_cast %30 : vector<1x64x16xf32> to vector<64x16xf32>
    %32 = vector.shape_cast %29 : vector<64x16xf32> to vector<1x64x16xf32>
    tpu.vector_store %arg4[%c0_26, %c0_27, %c0_28], %32 {strides = array<i32>} : memref<1x64x16xf32, #tpu.memory_space<vmem>>, vector<1x64x16xf32>,
    return
  }
  func.func @transform_0(%arg0: i32) -> (i32, i32, i32) {
    %c0_i32 = arith.constant 0 : i32
    %c0_i32_0 = arith.constant 0 : i32
    %c0_i32_1 = arith.constant 0 : i32
    return %arg0, %c0_i32, %c0_i32_0 : i32, i32, i32
  }
  func.func @transform_1(%arg0: i32) -> (i32, i32, i32) {
    %c0_i32 = arith.constant 0 : i32
    %c0_i32_0 = arith.constant 0 : i32
    %c0_i32_1 = arith.constant 0 : i32
    %c0_i32_2 = arith.constant 0 : i32
    return %c0_i32, %c0_i32_0, %c0_i32_1 : i32, i32, i32
  }
  func.func @transform_2(%arg0: i32) -> (i32, i32) {
    %c0_i32 = arith.constant 0 : i32
    %c0_i32_0 = arith.constant 0 : i32
    %c0_i32_1 = arith.constant 0 : i32
    return %c0_i32, %c0_i32_0 : i32, i32
  }
  func.func @transform_3(%arg0: i32) -> (i32, i32, i32) {
    %c0_i32 = arith.constant 0 : i32
    %c0_i32_0 = arith.constant 0 : i32
    %c0_i32_1 = arith.constant 0 : i32
    return %arg0, %c0_i32, %c0_i32_0 : i32, i32, i32
  }
}

module attributes {stable_mosaic.version = 11 : i64} {
  func.func @_conv_relu_pool_kernel(%arg0: i32, %arg1: memref<1x32x32xf32, #tpu.memory_space<vmem>>, %arg2: memref<3x32x64xbf16, #tpu.memory_space<vmem>>, %arg3: memref<1x64xf32, #tpu.memory_space<vmem>>, %arg4: memref<1x16x64xf32, #tpu.memory_space<vmem>>, %arg5: memref<48x32xf32, #tpu.memory_space<vmem>>, %arg6: memref<32x64xf32, #tpu.memory_space<vmem>>) attributes {dimension_semantics = [#tpu.dimension_semantics<parallel>], iteration_bounds = array<i64: 2>, scalar_prefetch = 0 : i64, scratch_operands = 2 : i64, tpu.core_type = #tpu.core_type<tc>, window_params = [{transform_indices = @transform_0, window_bounds = array<i64: 1, 32, 32>}, {pipeline_mode = #tpu.pipeline_mode<synchronous>, transform_indices = @transform_1, window_bounds = array<i64: 3, 32, 64>}, {pipeline_mode = #tpu.pipeline_mode<synchronous>, transform_indices = @transform_2, window_bounds = array<i64: 1, 64>}, {transform_indices = @transform_3, window_bounds = array<i64: 1, 16, 64>}]} {
    %c0 = arith.constant 0 : index
    %c0_0 = arith.constant 0 : index
    %c0_1 = arith.constant 0 : index
    %0 = vector.load %arg1[%c0, %c0_0, %c0_1] : memref<1x32x32xf32, #tpu.memory_space<vmem>>, vector<1x32x32xf32>
    %1 = vector.shape_cast %0 : vector<1x32x32xf32> to vector<32x32xf32>
    %cst = arith.constant 0.000000e+00 : f32
    %2 = vector.broadcast %cst : f32 to vector<48x32xf32>
    %c0_2 = arith.constant 0 : index
    %c0_3 = arith.constant 0 : index
    %3 = vector.load %arg5[%c0_2, %c0_3] : memref<48x32xf32, #tpu.memory_space<vmem>>, vector<48x32xf32>
    tpu.vector_store %arg5[%c0_2, %c0_3], %2 {strides = array<i32>} : memref<48x32xf32, #tpu.memory_space<vmem>>, vector<48x32xf32>,
    %c8 = arith.constant 8 : index
    %c0_4 = arith.constant 0 : index
    %4 = vector.load %arg5[%c8, %c0_4] : memref<48x32xf32, #tpu.memory_space<vmem>>, vector<32x32xf32>
    tpu.vector_store %arg5[%c8, %c0_4], %1 {strides = array<i32>} : memref<48x32xf32, #tpu.memory_space<vmem>>, vector<32x32xf32>,
    %c7 = arith.constant 7 : index
    %c0_5 = arith.constant 0 : index
    %5 = vector.load %arg5[%c7, %c0_5] : memref<48x32xf32, #tpu.memory_space<vmem>>, vector<32x32xf32>
    %c9 = arith.constant 9 : index
    %c0_6 = arith.constant 0 : index
    %6 = vector.load %arg5[%c9, %c0_6] : memref<48x32xf32, #tpu.memory_space<vmem>>, vector<32x32xf32>
    %7 = arith.truncf %5 : vector<32x32xf32> to vector<32x32xbf16>
    %c0_7 = arith.constant 0 : index
    %c0_8 = arith.constant 0 : index
    %c0_9 = arith.constant 0 : index
    %8 = vector.load %arg2[%c0_7, %c0_8, %c0_9] : memref<3x32x64xbf16, #tpu.memory_space<vmem>>, vector<1x32x64xbf16>
    %9 = vector.shape_cast %8 : vector<1x32x64xbf16> to vector<32x64xbf16>
    %cst_10 = arith.constant dense<0.000000e+00> : vector<32x64xf32>
    %10 = tpu.matmul %7, %9, %cst_10 {dimension_numbers = #tpu.dot_dimension_numbers<[1], [0], [0], [1], [0, 0, 1, 1], [], []>} : vector<32x32xbf16>, vector<32x64xbf16>, vector<32x64xf32> -> vector<32x64xf32>
    %11 = arith.truncf %1 : vector<32x32xf32> to vector<32x32xbf16>
    %c1 = arith.constant 1 : index
    %c0_11 = arith.constant 0 : index
    %c0_12 = arith.constant 0 : index
    %12 = vector.load %arg2[%c1, %c0_11, %c0_12] : memref<3x32x64xbf16, #tpu.memory_space<vmem>>, vector<1x32x64xbf16>
    %13 = vector.shape_cast %12 : vector<1x32x64xbf16> to vector<32x64xbf16>
    %cst_13 = arith.constant dense<0.000000e+00> : vector<32x64xf32>
    %14 = tpu.matmul %11, %13, %cst_13 {dimension_numbers = #tpu.dot_dimension_numbers<[1], [0], [0], [1], [0, 0, 1, 1], [], []>} : vector<32x32xbf16>, vector<32x64xbf16>, vector<32x64xf32> -> vector<32x64xf32>
    %15 = arith.addf %10, %14 : vector<32x64xf32>
    %16 = arith.truncf %6 : vector<32x32xf32> to vector<32x32xbf16>
    %c2 = arith.constant 2 : index
    %c0_14 = arith.constant 0 : index
    %c0_15 = arith.constant 0 : index
    %17 = vector.load %arg2[%c2, %c0_14, %c0_15] : memref<3x32x64xbf16, #tpu.memory_space<vmem>>, vector<1x32x64xbf16>
    %18 = vector.shape_cast %17 : vector<1x32x64xbf16> to vector<32x64xbf16>
    %cst_16 = arith.constant dense<0.000000e+00> : vector<32x64xf32>
    %19 = tpu.matmul %16, %18, %cst_16 {dimension_numbers = #tpu.dot_dimension_numbers<[1], [0], [0], [1], [0, 0, 1, 1], [], []>} : vector<32x32xbf16>, vector<32x64xbf16>, vector<32x64xf32> -> vector<32x64xf32>
    %20 = arith.addf %15, %19 : vector<32x64xf32>
    %c0_17 = arith.constant 0 : index
    %c0_18 = arith.constant 0 : index
    %21 = vector.load %arg3[%c0_17, %c0_18] : memref<1x64xf32, #tpu.memory_space<vmem>>, vector<1x64xf32>
    %22 = vector.broadcast %21 : vector<1x64xf32> to vector<32x64xf32>
    %23 = arith.addf %20, %22 : vector<32x64xf32>
    %cst_19 = arith.constant 0.000000e+00 : f32
    %24 = vector.broadcast %cst_19 : f32 to vector<32x64xf32>
    %25 = arith.maximumf %23, %24 : vector<32x64xf32>
    %c0_20 = arith.constant 0 : index
    %c0_21 = arith.constant 0 : index
    %26 = vector.load %arg6[%c0_20, %c0_21] : memref<32x64xf32, #tpu.memory_space<vmem>>, vector<32x64xf32>
    tpu.vector_store %arg6[%c0_20, %c0_21], %25 {strides = array<i32>} : memref<32x64xf32, #tpu.memory_space<vmem>>, vector<32x64xf32>,
    %c0_22 = arith.constant 0 : index
    %c0_23 = arith.constant 0 : index
    %27 = tpu.strided_load %arg6[%c0_22, %c0_23] {strides = array<i32: 2, 1>} : memref<32x64xf32, #tpu.memory_space<vmem>>, vector<16x64xf32>
    %c1_24 = arith.constant 1 : index
    %c0_25 = arith.constant 0 : index
    %28 = tpu.strided_load %arg6[%c1_24, %c0_25] {strides = array<i32: 2, 1>} : memref<32x64xf32, #tpu.memory_space<vmem>>, vector<16x64xf32>
    %29 = arith.maximumf %27, %28 : vector<16x64xf32>
    %c0_26 = arith.constant 0 : index
    %c0_27 = arith.constant 0 : index
    %c0_28 = arith.constant 0 : index
    %30 = vector.load %arg4[%c0_26, %c0_27, %c0_28] : memref<1x16x64xf32, #tpu.memory_space<vmem>>, vector<1x16x64xf32>
    %31 = vector.shape_cast %30 : vector<1x16x64xf32> to vector<16x64xf32>
    %32 = vector.shape_cast %29 : vector<16x64xf32> to vector<1x16x64xf32>
    tpu.vector_store %arg4[%c0_26, %c0_27, %c0_28], %32 {strides = array<i32>} : memref<1x16x64xf32, #tpu.memory_space<vmem>>, vector<1x16x64xf32>,
    return
  }
  func.func @transform_0(%arg0: i32) -> (i32, i32, i32) {
    %c0_i32 = arith.constant 0 : i32
    %c0_i32_0 = arith.constant 0 : i32
    %c0_i32_1 = arith.constant 0 : i32
    return %arg0, %c0_i32, %c0_i32_0 : i32, i32, i32
  }
  func.func @transform_1(%arg0: i32) -> (i32, i32, i32) {
    %c0_i32 = arith.constant 0 : i32
    %c0_i32_0 = arith.constant 0 : i32
    %c0_i32_1 = arith.constant 0 : i32
    %c0_i32_2 = arith.constant 0 : i32
    return %c0_i32, %c0_i32_0, %c0_i32_1 : i32, i32, i32
  }
  func.func @transform_2(%arg0: i32) -> (i32, i32) {
    %c0_i32 = arith.constant 0 : i32
    %c0_i32_0 = arith.constant 0 : i32
    %c0_i32_1 = arith.constant 0 : i32
    return %c0_i32, %c0_i32_0 : i32, i32
  }
  func.func @transform_3(%arg0: i32) -> (i32, i32, i32) {
    %c0_i32 = arith.constant 0 : i32
    %c0_i32_0 = arith.constant 0 : i32
    %c0_i32_1 = arith.constant 0 : i32
    return %arg0, %c0_i32, %c0_i32_0 : i32, i32, i32
  }
}

module attributes {stable_mosaic.version = 11 : i64} {
  func.func @_linear_kernel(%arg0: i32, %arg1: i32, %arg2: i32, %arg3: memref<8x512xbf16, #tpu.memory_space<vmem>>, %arg4: memref<512x128xbf16, #tpu.memory_space<vmem>>, %arg5: memref<1x128xf32, #tpu.memory_space<vmem>>, %arg6: memref<8x128xf32, #tpu.memory_space<vmem>>, %arg7: memref<8x128xf32, #tpu.memory_space<vmem>>) attributes {dimension_semantics = [#tpu.dimension_semantics<parallel>, #tpu.dimension_semantics<parallel>, #tpu.dimension_semantics<arbitrary>], iteration_bounds = array<i64: 1, 1, 2>, scalar_prefetch = 0 : i64, scratch_operands = 1 : i64, tpu.core_type = #tpu.core_type<tc>, window_params = [{transform_indices = @transform_0, window_bounds = array<i64: 8, 512>}, {transform_indices = @transform_1, window_bounds = array<i64: 512, 128>}, {transform_indices = @transform_2, window_bounds = array<i64: 1, 128>}, {transform_indices = @transform_3, window_bounds = array<i64: 8, 128>}]} {
    %c0_i32 = arith.constant 0 : i32
    %0 = arith.cmpi eq, %arg2, %c0_i32 : i32
    %1 = arith.extui %0 : i1 to i32
    %c0_i32_0 = arith.constant 0 : i32
    %2 = arith.cmpi ne, %1, %c0_i32_0 : i32
    scf.if %2 {
      %cst_9 = arith.constant 0.000000e+00 : f32
      %12 = vector.broadcast %cst_9 : f32 to vector<8x128xf32>
      %c0_10 = arith.constant 0 : index
      %c0_11 = arith.constant 0 : index
      %13 = vector.load %arg7[%c0_10, %c0_11] : memref<8x128xf32, #tpu.memory_space<vmem>>, vector<8x128xf32>
      tpu.vector_store %arg7[%c0_10, %c0_11], %12 {strides = array<i32>} : memref<8x128xf32, #tpu.memory_space<vmem>>, vector<8x128xf32>,
    } else {
    }
    %c0 = arith.constant 0 : index
    %c0_1 = arith.constant 0 : index
    %3 = vector.load %arg7[%c0, %c0_1] : memref<8x128xf32, #tpu.memory_space<vmem>>, vector<8x128xf32>
    %c0_2 = arith.constant 0 : index
    %c0_3 = arith.constant 0 : index
    %4 = vector.load %arg3[%c0_2, %c0_3] : memref<8x512xbf16, #tpu.memory_space<vmem>>, vector<8x512xbf16>
    %c0_4 = arith.constant 0 : index
    %c0_5 = arith.constant 0 : index
    %5 = vector.load %arg4[%c0_4, %c0_5] : memref<512x128xbf16, #tpu.memory_space<vmem>>, vector<512x128xbf16>
    %cst = arith.constant dense<0.000000e+00> : vector<8x128xf32>
    %6 = tpu.matmul %4, %5, %cst {dimension_numbers = #tpu.dot_dimension_numbers<[1], [0], [0], [1], [0, 0, 1, 1], [], []>} : vector<8x512xbf16>, vector<512x128xbf16>, vector<8x128xf32> -> vector<8x128xf32>
    %7 = arith.addf %3, %6 : vector<8x128xf32>
    %c0_6 = arith.constant 0 : index
    %c0_7 = arith.constant 0 : index
    %8 = vector.load %arg7[%c0_6, %c0_7] : memref<8x128xf32, #tpu.memory_space<vmem>>, vector<8x128xf32>
    tpu.vector_store %arg7[%c0_6, %c0_7], %7 {strides = array<i32>} : memref<8x128xf32, #tpu.memory_space<vmem>>, vector<8x128xf32>,
    %c1_i32 = arith.constant 1 : i32
    %9 = arith.cmpi eq, %arg2, %c1_i32 : i32
    %10 = arith.extui %9 : i1 to i32
    %c0_i32_8 = arith.constant 0 : i32
    %11 = arith.cmpi ne, %10, %c0_i32_8 : i32
    scf.if %11 {
      %c0_9 = arith.constant 0 : index
      %c0_10 = arith.constant 0 : index
      %12 = vector.load %arg7[%c0_9, %c0_10] : memref<8x128xf32, #tpu.memory_space<vmem>>, vector<8x128xf32>
      %c0_11 = arith.constant 0 : index
      %c0_12 = arith.constant 0 : index
      %13 = vector.load %arg5[%c0_11, %c0_12] : memref<1x128xf32, #tpu.memory_space<vmem>>, vector<1x128xf32>
      %14 = vector.broadcast %13 : vector<1x128xf32> to vector<8x128xf32>
      %15 = arith.addf %12, %14 : vector<8x128xf32>
      %cst_13 = arith.constant 0.000000e+00 : f32
      %16 = vector.broadcast %cst_13 : f32 to vector<8x128xf32>
      %17 = arith.maximumf %15, %16 : vector<8x128xf32>
      %c0_14 = arith.constant 0 : index
      %c0_15 = arith.constant 0 : index
      %18 = vector.load %arg6[%c0_14, %c0_15] : memref<8x128xf32, #tpu.memory_space<vmem>>, vector<8x128xf32>
      tpu.vector_store %arg6[%c0_14, %c0_15], %17 {strides = array<i32>} : memref<8x128xf32, #tpu.memory_space<vmem>>, vector<8x128xf32>,
    } else {
    }
    return
  }
  func.func @transform_0(%arg0: i32, %arg1: i32, %arg2: i32) -> (i32, i32) {
    %c0_i32 = arith.constant 0 : i32
    return %arg0, %arg2 : i32, i32
  }
  func.func @transform_1(%arg0: i32, %arg1: i32, %arg2: i32) -> (i32, i32) {
    %c0_i32 = arith.constant 0 : i32
    return %arg2, %arg1 : i32, i32
  }
  func.func @transform_2(%arg0: i32, %arg1: i32, %arg2: i32) -> (i32, i32) {
    %c0_i32 = arith.constant 0 : i32
    %c0_i32_0 = arith.constant 0 : i32
    return %c0_i32, %arg1 : i32, i32
  }
  func.func @transform_3(%arg0: i32, %arg1: i32, %arg2: i32) -> (i32, i32) {
    %c0_i32 = arith.constant 0 : i32
    return %arg0, %arg1 : i32, i32
  }
}

module attributes {stable_mosaic.version = 11 : i64} {
  func.func @_linear_kernel(%arg0: i32, %arg1: i32, %arg2: i32, %arg3: memref<8x128xbf16, #tpu.memory_space<vmem>>, %arg4: memref<128x128xbf16, #tpu.memory_space<vmem>>, %arg5: memref<1x128xf32, #tpu.memory_space<vmem>>, %arg6: memref<8x128xf32, #tpu.memory_space<vmem>>, %arg7: memref<8x128xf32, #tpu.memory_space<vmem>>) attributes {dimension_semantics = [#tpu.dimension_semantics<parallel>, #tpu.dimension_semantics<parallel>, #tpu.dimension_semantics<arbitrary>], iteration_bounds = array<i64: 1, 1, 1>, scalar_prefetch = 0 : i64, scratch_operands = 1 : i64, tpu.core_type = #tpu.core_type<tc>, window_params = [{transform_indices = @transform_0, window_bounds = array<i64: 8, 128>}, {transform_indices = @transform_1, window_bounds = array<i64: 128, 128>}, {transform_indices = @transform_2, window_bounds = array<i64: 1, 128>}, {transform_indices = @transform_3, window_bounds = array<i64: 8, 128>}]} {
    %c0_i32 = arith.constant 0 : i32
    %0 = arith.cmpi eq, %arg2, %c0_i32 : i32
    %1 = arith.extui %0 : i1 to i32
    %c0_i32_0 = arith.constant 0 : i32
    %2 = arith.cmpi ne, %1, %c0_i32_0 : i32
    scf.if %2 {
      %cst_10 = arith.constant 0.000000e+00 : f32
      %12 = vector.broadcast %cst_10 : f32 to vector<8x128xf32>
      %c0_11 = arith.constant 0 : index
      %c0_12 = arith.constant 0 : index
      %13 = vector.load %arg7[%c0_11, %c0_12] : memref<8x128xf32, #tpu.memory_space<vmem>>, vector<8x128xf32>
      tpu.vector_store %arg7[%c0_11, %c0_12], %12 {strides = array<i32>} : memref<8x128xf32, #tpu.memory_space<vmem>>, vector<8x128xf32>,
    } else {
    }
    %c0 = arith.constant 0 : index
    %c0_1 = arith.constant 0 : index
    %3 = vector.load %arg7[%c0, %c0_1] : memref<8x128xf32, #tpu.memory_space<vmem>>, vector<8x128xf32>
    %c0_2 = arith.constant 0 : index
    %c0_3 = arith.constant 0 : index
    %4 = vector.load %arg3[%c0_2, %c0_3] : memref<8x128xbf16, #tpu.memory_space<vmem>>, vector<8x128xbf16>
    %c0_4 = arith.constant 0 : index
    %c0_5 = arith.constant 0 : index
    %5 = vector.load %arg4[%c0_4, %c0_5] : memref<128x128xbf16, #tpu.memory_space<vmem>>, vector<128x128xbf16>
    %cst = arith.constant dense<0.000000e+00> : vector<8x128xf32>
    %6 = tpu.matmul %4, %5, %cst {dimension_numbers = #tpu.dot_dimension_numbers<[1], [0], [0], [1], [0, 0, 1, 1], [], []>} : vector<8x128xbf16>, vector<128x128xbf16>, vector<8x128xf32> -> vector<8x128xf32>
    %7 = arith.addf %3, %6 : vector<8x128xf32>
    %c0_6 = arith.constant 0 : index
    %c0_7 = arith.constant 0 : index
    %8 = vector.load %arg7[%c0_6, %c0_7] : memref<8x128xf32, #tpu.memory_space<vmem>>, vector<8x128xf32>
    tpu.vector_store %arg7[%c0_6, %c0_7], %7 {strides = array<i32>} : memref<8x128xf32, #tpu.memory_space<vmem>>, vector<8x128xf32>,
    %c0_i32_8 = arith.constant 0 : i32
    %9 = arith.cmpi eq, %arg2, %c0_i32_8 : i32
    %10 = arith.extui %9 : i1 to i32
    %c0_i32_9 = arith.constant 0 : i32
    %11 = arith.cmpi ne, %10, %c0_i32_9 : i32
    scf.if %11 {
      %c0_10 = arith.constant 0 : index
      %c0_11 = arith.constant 0 : index
      %12 = vector.load %arg7[%c0_10, %c0_11] : memref<8x128xf32, #tpu.memory_space<vmem>>, vector<8x128xf32>
      %c0_12 = arith.constant 0 : index
      %c0_13 = arith.constant 0 : index
      %13 = vector.load %arg5[%c0_12, %c0_13] : memref<1x128xf32, #tpu.memory_space<vmem>>, vector<1x128xf32>
      %14 = vector.broadcast %13 : vector<1x128xf32> to vector<8x128xf32>
      %15 = arith.addf %12, %14 : vector<8x128xf32>
      %16 = arith.negf %15 : vector<8x128xf32>
      %17 = math.exp %16 : vector<8x128xf32>
      %cst_14 = arith.constant 1.000000e+00 : f32
      %18 = vector.broadcast %cst_14 : f32 to vector<8x128xf32>
      %19 = arith.addf %18, %17 : vector<8x128xf32>
      %20 = arith.divf %18, %19 : vector<8x128xf32>
      %c0_15 = arith.constant 0 : index
      %c0_16 = arith.constant 0 : index
      %21 = vector.load %arg6[%c0_15, %c0_16] : memref<8x128xf32, #tpu.memory_space<vmem>>, vector<8x128xf32>
      tpu.vector_store %arg6[%c0_15, %c0_16], %20 {strides = array<i32>} : memref<8x128xf32, #tpu.memory_space<vmem>>, vector<8x128xf32>,
    } else {
    }
    return
  }
  func.func @transform_0(%arg0: i32, %arg1: i32, %arg2: i32) -> (i32, i32) {
    %c0_i32 = arith.constant 0 : i32
    return %arg0, %arg2 : i32, i32
  }
  func.func @transform_1(%arg0: i32, %arg1: i32, %arg2: i32) -> (i32, i32) {
    %c0_i32 = arith.constant 0 : i32
    return %arg2, %arg1 : i32, i32
  }
  func.func @transform_2(%arg0: i32, %arg1: i32, %arg2: i32) -> (i32, i32) {
    %c0_i32 = arith.constant 0 : i32
    %c0_i32_0 = arith.constant 0 : i32
    return %c0_i32, %arg1 : i32, i32
  }
  func.func @transform_3(%arg0: i32, %arg1: i32, %arg2: i32) -> (i32, i32) {
    %c0_i32 = arith.constant 0 : i32
    return %arg0, %arg1 : i32, i32
  }
}

</mosaic_0001>

<bundles_post_ra>
// kernel: cnn1d_forward.7
= control target key start
LH: loop header
LB: loop body
LE: loop exit
PB: predicated region body
PF: predicated region fallthrough
CT: control target
= control target key end

     0   :  { %s620_s12 = smov 0   ;;  %s684_s0 = inlined_call_operand.vmem [shape: f32[2,32,32], index: 0, kind: input, shape index: {}]   ;;  %s685_s1 = inlined_call_operand.vmem [shape: bf16[3,32,64], index: 1, kind: input, shape index: {}]   ;;  %s686_s2 = inlined_call_operand.vmem [shape: f32[1,64], index: 2, kind: input, shape index: {}]   ;;  %s687_s3 = inlined_call_operand.vmem [shape: f32[2,16,64], index: 3, kind: output, shape index: {}]  }
   0x1 LB: > { %s506_s13 = sadd.s32 4294967295, %s597_s12   ;;  %p510_p0 = scmp.ge.s32.totalorder %s597_s12, 1  ;;  %s597_s12 = sphi %s620_s12, %s13_s12  }
   0x2   : > { %p137_p1 = scmp.lt.s32.totalorder %s597_s12, 3 }
   0x4   : > { %p138_p2 = pnand %p510_p0, %p137_p1 }
   0x5   : > { %p161_p3 = scmp.lt.s32.totalorder (!%p138_p2), %s506_s13, 1 }
   0x6   : > { %141 = sbr.rel (%p138_p2) target bundleno = 244 (0xf4), region = 32 }
   0xb   : > { %v585_v0 = vld [vmem:[%s685_s1 + $0x18] sm:$0xff]   ;;  %v586_v1 = vld [vmem:[%s685_s1 + $0x10] sm:$0xff]   ;;  %vm176_vm0 = vcmask 261120   ;;  %s689_s13 = smov (!%p161_p3, %s506_s13), 1  ;;  %v599_v2 = vmov 0.0   ;;  %v587_v3 = vld [vmem:[%s685_s1 + $0x8] sm:$0xff]  }
   0xc   : > { %552 = vmatprep.subr.bf16.mxu0 %v585_v0  ;;  %177 = vst.msk [vmem:[#allocation2] sm:$0xff] %vm176_vm0, %v599_v2  ;;  %178 = vst.msk [vmem:[#allocation2 + $0x8] sm:$0xff] %vm176_vm0, %v599_v2  ;;  %s538_s20 = sshll.u32 %s689_s13, 5  ;;  %v588_v4 = vld [vmem:[%s685_s1 + $0x28] sm:$0xff]   ;;  %v589_v5 = vld [vmem:[%s685_s1] sm:$0xff]   ;;  %560 = vmatprep.subr.bf16.mxu1 %v587_v3  ;;  %vm435_vm1 = vcmask 523264  }
   0xd   : > { %553 = vmatpush3.bf16.msra.mxu0 %v585_v0  ;;  %179 = vst.msk [vmem:[#allocation2 + $0x10] sm:$0xff] %vm176_vm0, %v599_v2  ;;  %182 = vst.msk [vmem:[#allocation2 + $0x28] sm:$0xff] %vm176_vm0, %v599_v2  ;;  %s165_s27 = scalar_lea.vmem %s684_s0, %s538_s20  ;;  %561 = vmatpush3.bf16.msra.mxu1 %v587_v3  ;;  %v590_v12 = vld [vmem:[%s685_s1 + $0x20] sm:$0xff]   ;;  %s539_s5 = sshll.u32 %s689_s13, 4 }
   0xe   : > { %180 = vst.msk [vmem:[#allocation2 + $0x18] sm:$0xff] %vm176_vm0, %v599_v2  ;;  %181 = vst.msk [vmem:[#allocation2 + $0x20] sm:$0xff] %vm176_vm0, %v599_v2  ;;  %554 = vmatprep.subr.bf16.mxu0 %v586_v1  ;;  %v172_v6 = vld [vmem:[%s165_s27] sm:$0xff]  ;;  %v173_v7 = vld [vmem:[%s165_s27 + $0x8] sm:$0xff]  ;;  %562 = vmatprep.subr.bf16.mxu1 %v589_v5  ;;  %s170_s8 = scalar_lea.vmem %s687_s3, %s539_s5 }
   0xf   : > { %v174_v8 = vld [vmem:[%s165_s27 + $0x10] sm:$0xff]  ;;  %183 = vst.msk [vmem:[#allocation2 + $0x8] sm:$0xff] %vm176_vm0, %v172_v6  ;;  %184 = vst.msk [vmem:[#allocation2 + $0x10] sm:$0xff] %vm176_vm0, %v173_v7  ;;  %v201_v9 = vpack.c.bf16 %v173_v7, %v172_v6  ;;  %v175_v10 = vld [vmem:[%s165_s27 + $0x18] sm:$0xff] }
  0x10   : > { %185 = vst.msk [vmem:[#allocation2 + $0x18] sm:$0xff] %vm176_vm0, %v174_v8  ;;  %186 = vst.msk [vmem:[#allocation2 + $0x20] sm:$0xff] %vm176_vm0, %v175_v10  ;;  %v202_v11 = vpack.c.bf16 %v175_v10, %v174_v8  ;;  %v535_v32 = vld [vmem:[%s686_s2] ss:$0 sm:$0xff] }
  0x11   : > { %555 = vmatpush3.bf16.msra.mxu0 %v586_v1  ;;  %556 = vmatprep.mubr.msk.bf16.mxu0 %vm176_vm0, %v201_v9 }
  0x12   : > { %568 = vmatprep.subr.bf16.mxu0 %v588_v4  ;;  %563 = vmatpush3.bf16.msra.mxu1 %v589_v5 }
  0x14   : > { %557 = vmatmul.mubr.msk.bf16.vlgmr.msra.gmra.mxu0 %vm176_vm0, %v202_v11 }
  0x15   : > { %569 = vmatpush3.bf16.msra.mxu0 %v588_v4 }
  0x16   : > { %570 = vmatprep.subr.bf16.mxu0 %v590_v12  ;;  %v187_v13 = vld [vmem:[#allocation2 + $0x7] sm:$0xff]  ;;  %v188_v14 = vld [vmem:[#allocation2 + $0xf] sm:$0xff] }
  0x17   : > { %v189_v15 = vld [vmem:[#allocation2 + $0x17] sm:$0xff]  ;;  %v195_v16 = vpack.c.bf16 %v188_v14, %v187_v13  ;;  %v190_v17 = vld [vmem:[#allocation2 + $0x1f] sm:$0xff]  ;;  %v191_v18 = vld [vmem:[#allocation2 + $0x9] sm:$0xff] }
  0x18   : > { %v192_v19 = vld [vmem:[#allocation2 + $0x11] sm:$0xff]  ;;  %v196_v20 = vpack.c.bf16 %v190_v17, %v189_v15  ;;  %v193_v22 = vld [vmem:[#allocation2 + $0x19] sm:$0xff]  ;;  %v194_v23 = vld [vmem:[#allocation2 + $0x21] sm:$0xff] }
  0x19   : > { %571 = vmatpush3.bf16.msra.mxu0 %v590_v12  ;;  %v342_v21 = vpack.c.bf16 %v192_v19, %v191_v18  ;;  %564 = vmatprep.mubr.msk.bf16.mxu1 %vm176_vm0, %v195_v16  ;;  %v343_v24 = vpack.c.bf16 %v194_v23, %v193_v22 }
  0x1a   : > { %565 = vmatmul.mubr.msk.bf16.vlgmr.msra.gmra.mxu1 %vm176_vm0, %v196_v20 }
  0x1b   : > { %572 = vmatprep.mubr.msk.bf16.mxu0 %vm176_vm0, %v342_v21 }
  0x1c   : > { %573 = vmatmul.mubr.msk.bf16.vlgmr.msra.gmra.mxu0 %vm176_vm0, %v343_v24 }
  0xd4   : > { %v558_v25 = vpop.f32.mrf.mxu0 }
  0xd6   : > { %v260_v26 = vpop.f32.mrf.mxu0 }
  0xd8   : > { %v559_v27 = vpop.f32.mrf.mxu0 }
  0xda   : > { %v263_v28 = vpop.f32.mrf.mxu0  ;;  %v566_v29 = vpop.f32.mrf.mxu1 }
  0xdb   : > { %v336_v30 = vadd.f32 %v566_v29, %v558_v25 }
  0xdc   : > { %v574_v31 = vpop.f32.mrf.mxu0  ;;  %v327_v33 = vpop.f32.mrf.mxu1 }
  0xdd   : > { %v418_v34 = vadd.f32 %v574_v31, %v336_v30  ;;  %v328_v35 = vadd.f32 %v327_v33, %v260_v26 }
  0xde   : > { %v401_v36 = vpop.f32.mrf.mxu0  ;;  %v567_v37 = vpop.f32.mrf.mxu1 }
  0xdf   : > { %v429_v38 = vadd.f32 %v535_v32, %v418_v34  ;;  %v416_v39 = vadd.f32 %v401_v36, %v328_v35  ;;  %v339_v40 = vadd.f32 %v567_v37, %v559_v27 }
  0xe0   : > { %v575_v41 = vpop.f32.mrf.mxu0  ;;  %v330_v42 = vpop.f32.mrf.mxu1 }
  0xe1   : > { %v433_v43 = vmax.f32 %v429_v38, 0.0  ;;  %v427_v44 = vadd.f32 %v535_v32, %v416_v39  ;;  %v419_v45 = vadd.f32 %v575_v41, %v339_v40  ;;  %v331_v46 = vadd.f32 %v330_v42, %v263_v28 }
  0xe2   : > { %v404_v47 = vpop.f32.mrf.mxu0 }
  0xe3   : > { %438 = vst.msk [vmem:[#allocation3 + $0x10] sm:$0xff] %vm435_vm1, %v433_v43  ;;  %v431_v48 = vmax.f32 %v427_v44, 0.0  ;;  %v430_v49 = vadd.f32 %v535_v32, %v419_v45  ;;  %v417_v50 = vadd.f32 %v404_v47, %v331_v46 }
  0xe5   : > { %436 = vst.msk [vmem:[#allocation3] sm:$0xff] %vm435_vm1, %v431_v48  ;;  %v434_v51 = vmax.f32 %v430_v49, 0.0  ;;  %v428_v52 = vadd.f32 %v535_v32, %v417_v50 }
  0xe7   : > { %439 = vst.msk [vmem:[#allocation3 + $0x18] sm:$0xff] %vm435_vm1, %v434_v51  ;;  %v432_v53 = vmax.f32 %v428_v52, 0.0 }
  0xe9   : > { %437 = vst.msk [vmem:[#allocation3 + $0x8] sm:$0xff] %vm435_vm1, %v432_v53 }
  0xee   : > { %v442_v54 = vld [vmem:[#allocation3 + $0x10] ss:$2 sm:$0xff]  ;;  %v446_v55 = vld [vmem:[#allocation3 + $0x11] ss:$2 sm:$0xff] }
  0xef   : > { %v448_v56 = vmax.f32 %v442_v54, %v446_v55 }
  0xf0   : > { %v440_v57 = vld [vmem:[#allocation3] ss:$2 sm:$0xff]  ;;  %v444_v58 = vld [vmem:[#allocation3 + $0x1] ss:$2 sm:$0xff] }
  0xf1   : > { %450 = vst.msk [vmem:[%s170_s8 + $0x8] sm:$0xff] %vm435_vm1, %v448_v56  ;;  %v447_v59 = vmax.f32 %v440_v57, %v444_v58 }
  0xf3   : > { %449 = vst.msk [vmem:[%s170_s8] sm:$0xff] %vm435_vm1, %v447_v59 }
  0xf4 PF: > { %s13_s12 = sadd.s32 1, %s597_s12  }
  0xf5   : > { %p10_p4 = scmp.ge.s32.totalorder %s13_s12, 4  }
  0xf7   :  { %12 = sbr.rel (!%p10_p4) target bundleno = 1 (0x1), region = 67 }

// kernel: cnn1d_forward.6
= control target key start
LH: loop header
LB: loop body
LE: loop exit
PB: predicated region body
PF: predicated region fallthrough
CT: control target
= control target key end

     0   :  { %s723_s12 = smov 0   ;;  %s798_s0 = inlined_call_operand.vmem [shape: f32[2,64,16], index: 0, kind: input, shape index: {}]   ;;  %s799_s1 = inlined_call_operand.vmem [shape: bf16[3,16,32], index: 1, kind: input, shape index: {}]   ;;  %s800_s2 = inlined_call_operand.vmem [shape: f32[1,32], index: 2, kind: input, shape index: {}]   ;;  %s801_s3 = inlined_call_operand.vmem [shape: f32[2,32,32], index: 3, kind: output, shape index: {}]  }
   0x1 LB: > { %s602_s13 = sadd.s32 4294967295, %s700_s12   ;;  %p606_p0 = scmp.ge.s32.totalorder %s700_s12, 1  ;;  %s700_s12 = sphi %s723_s12, %s13_s12  }
   0x2   : > { %p137_p1 = scmp.lt.s32.totalorder %s700_s12, 3 }
   0x4   : > { %p138_p2 = pnand %p606_p0, %p137_p1 }
   0x5   : > { %p161_p3 = scmp.lt.s32.totalorder (!%p138_p2), %s602_s13, 1 }
   0x6   : > { %141 = sbr.rel (%p138_p2) target bundleno = 256 (0x100), region = 32 }
   0xb   : > { %v691_v0 = vld [vmem:[%s799_s1 + $0x8] sm:$0xff]   ;;  %vm180_vm0 = vcmask 130048   ;;  %s803_s13 = smov (!%p161_p3, %s602_s13), 1  ;;  %v702_v1 = vmov 0.0   ;;  %v692_v2 = vld [vmem:[%s799_s1] sm:$0xff]   ;;  %v693_v3 = vld [vmem:[%s799_s1 + $0x10] sm:$0xff]  }
   0xc   : > { %680 = vmatprep.subr.bf16.mxu1 %v691_v0  ;;  %650 = vmatprep.subr.bf16.mxu0 %v691_v0  ;;  %182 = vst.msk [vmem:[#allocation2 + $0x8] sm:$0xff] %vm180_vm0, %v702_v1  ;;  %183 = vst.msk [vmem:[#allocation2 + $0x10] sm:$0xff] %vm180_vm0, %v702_v1  ;;  %s633_s20 = sshll.u32 %s803_s13, 6  ;;  %v630_v51 = vld [vmem:[%s800_s2] ss:$0 sm:$0xff]  ;;  %vm515_vm1 = vcmask 261120  }
   0xd   : > { %181 = vst.msk [vmem:[#allocation2] sm:$0xff] %vm180_vm0, %v702_v1  ;;  %184 = vst.msk [vmem:[#allocation2 + $0x18] sm:$0xff] %vm180_vm0, %v702_v1  ;;  %681 = vmatpush3.bf16.msra.mxu1 %v691_v0  ;;  %651 = vmatpush3.bf16.msra.mxu0 %v691_v0  ;;  %s165_s23 = scalar_lea.vmem %s798_s0, %s633_s20  ;;  %s634_s26 = sshll.u32 %s803_s13, 5 }
   0xe   : > { %185 = vst.msk [vmem:[#allocation2 + $0x20] sm:$0xff] %vm180_vm0, %v702_v1  ;;  %186 = vst.msk [vmem:[#allocation2 + $0x28] sm:$0xff] %vm180_vm0, %v702_v1  ;;  %660 = vmatprep.subr.bf16.mxu1 %v692_v2  ;;  %670 = vmatprep.subr.bf16.mxu0 %v693_v3  ;;  %v172_v4 = vld [vmem:[%s165_s23] sm:$0xff]  ;;  %v173_v5 = vld [vmem:[%s165_s23 + $0x8] sm:$0xff]  ;;  %s170_s29 = scalar_lea.vmem %s801_s3, %s634_s26 }
   0xf   : > { %187 = vst.msk [vmem:[#allocation2 + $0x30] sm:$0xff] %vm180_vm0, %v702_v1  ;;  %188 = vst.msk [vmem:[#allocation2 + $0x38] sm:$0xff] %vm180_vm0, %v702_v1  ;;  %v176_v6 = vld [vmem:[%s165_s23 + $0x20] sm:$0xff]  ;;  %v221_v7 = vpack.c.bf16 %v173_v5, %v172_v4  ;;  %v177_v8 = vld [vmem:[%s165_s23 + $0x28] sm:$0xff] }
  0x10   : > { %189 = vst.msk [vmem:[#allocation2 + $0x40] sm:$0xff] %vm180_vm0, %v702_v1  ;;  %190 = vst.msk [vmem:[#allocation2 + $0x48] sm:$0xff] %vm180_vm0, %v702_v1  ;;  %v174_v9 = vld [vmem:[%s165_s23 + $0x10] sm:$0xff]  ;;  %v175_v10 = vld [vmem:[%s165_s23 + $0x18] sm:$0xff]  ;;  %v223_v11 = vpack.c.bf16 %v177_v8, %v176_v6 }
  0x11   : > { %191 = vst.msk [vmem:[#allocation2 + $0x8] sm:$0xff] %vm180_vm0, %v172_v4  ;;  %192 = vst.msk [vmem:[#allocation2 + $0x10] sm:$0xff] %vm180_vm0, %v173_v5  ;;  %v222_v12 = vpack.c.bf16 %v175_v10, %v174_v9  ;;  %v178_v13 = vld [vmem:[%s165_s23 + $0x30] sm:$0xff]  ;;  %v179_v14 = vld [vmem:[%s165_s23 + $0x38] sm:$0xff]  ;;  %652 = vmatprep.mubr.msk.bf16.mxu0 %vm180_vm0, %v221_v7 }
  0x12   : > { %195 = vst.msk [vmem:[#allocation2 + $0x28] sm:$0xff] %vm180_vm0, %v176_v6  ;;  %196 = vst.msk [vmem:[#allocation2 + $0x30] sm:$0xff] %vm180_vm0, %v177_v8  ;;  %v224_v15 = vpack.c.bf16 %v179_v14, %v178_v13  ;;  %656 = vmatprep.mubr.msk.bf16.mxu1 %vm180_vm0, %v223_v11 }
  0x13   : > { %193 = vst.msk [vmem:[#allocation2 + $0x18] sm:$0xff] %vm180_vm0, %v174_v9  ;;  %194 = vst.msk [vmem:[#allocation2 + $0x20] sm:$0xff] %vm180_vm0, %v175_v10  ;;  %653 = vmatmul.mubr.msk.bf16.vlgmr.msra.gmra.mxu0 %vm180_vm0, %v222_v12 }
  0x14   : > { %197 = vst.msk [vmem:[#allocation2 + $0x38] sm:$0xff] %vm180_vm0, %v178_v13  ;;  %198 = vst.msk [vmem:[#allocation2 + $0x40] sm:$0xff] %vm180_vm0, %v179_v14  ;;  %657 = vmatmul.mubr.msk.bf16.vlgmr.msra.gmra.mxu1 %vm180_vm0, %v224_v15  ;;  %671 = vmatpush3.bf16.msra.mxu0 %v693_v3 }
  0x15   : > { %661 = vmatpush3.bf16.msra.mxu1 %v692_v2 }
  0x18   : > { %v199_v16 = vld [vmem:[#allocation2 + $0x7] sm:$0xff]  ;;  %v200_v17 = vld [vmem:[#allocation2 + $0xf] sm:$0xff] }
  0x19   : > { %v207_v18 = vld [vmem:[#allocation2 + $0x9] sm:$0xff]  ;;  %v215_v19 = vpack.c.bf16 %v200_v17, %v199_v16 }
  0x1a   : > { %v208_v20 = vld [vmem:[#allocation2 + $0x11] sm:$0xff]  ;;  %v202_v22 = vld [vmem:[#allocation2 + $0x1f] sm:$0xff]  ;;  %v203_v27 = vld [vmem:[#allocation2 + $0x27] sm:$0xff] }
  0x1b   : > { %v201_v21 = vld [vmem:[#allocation2 + $0x17] sm:$0xff]  ;;  %v394_v23 = vpack.c.bf16 %v208_v20, %v207_v18  ;;  %v210_v26 = vld [vmem:[#allocation2 + $0x21] sm:$0xff]  ;;  %662 = vmatprep.mubr.msk.bf16.mxu1 %vm180_vm0, %v215_v19  ;;  %v204_v29 = vld [vmem:[#allocation2 + $0x2f] sm:$0xff] }
  0x1c   : > { %v216_v24 = vpack.c.bf16 %v202_v22, %v201_v21  ;;  %v209_v25 = vld [vmem:[#allocation2 + $0x19] sm:$0xff]  ;;  %v211_v30 = vld [vmem:[#allocation2 + $0x29] sm:$0xff]  ;;  %v212_v31 = vld [vmem:[#allocation2 + $0x31] sm:$0xff]  ;;  %v217_v32 = vpack.c.bf16 %v204_v29, %v203_v27 }
  0x1d   : > { %v395_v28 = vpack.c.bf16 %v210_v26, %v209_v25  ;;  %672 = vmatprep.mubr.msk.bf16.mxu0 %vm180_vm0, %v394_v23  ;;  %v396_v33 = vpack.c.bf16 %v212_v31, %v211_v30  ;;  %v205_v34 = vld [vmem:[#allocation2 + $0x37] sm:$0xff]  ;;  %v206_v35 = vld [vmem:[#allocation2 + $0x3f] sm:$0xff] }
  0x1e   : > { %663 = vmatmul.mubr.msk.bf16.vlgmr.msra.gmra.mxu1 %vm180_vm0, %v216_v24  ;;  %v213_v36 = vld [vmem:[#allocation2 + $0x39] sm:$0xff]  ;;  %v214_v37 = vld [vmem:[#allocation2 + $0x41] sm:$0xff]  ;;  %v218_v38 = vpack.c.bf16 %v206_v35, %v205_v34 }
  0x1f   : > { %673 = vmatmul.mubr.msk.bf16.vlgmr.msra.gmra.mxu0 %vm180_vm0, %v395_v28  ;;  %666 = vmatprep.mubr.msk.bf16.mxu1 %vm180_vm0, %v217_v32  ;;  %v397_v39 = vpack.c.bf16 %v214_v37, %v213_v36 }
  0x20   : > { %676 = vmatprep.mubr.msk.bf16.mxu0 %vm180_vm0, %v396_v33 }
  0x26   : > { %667 = vmatmul.mubr.msk.bf16.gmra.mxu1 %vm180_vm0, %v218_v38 }
  0x27   : > { %677 = vmatmul.mubr.msk.bf16.gmra.mxu0 %vm180_vm0, %v397_v39 }
  0xd3   : > { %v654_v40 = vpop.f32.mrf.mxu0 }
  0xd4   : > { %v658_v41 = vpop.f32.mrf.mxu1 }
  0xd5   : > { %v280_v42 = vpop.f32.mrf.mxu0 }
  0xd6   : > { %v296_v43 = vpop.f32.mrf.mxu1 }
  0xd7   : > { %v655_v44 = vpop.f32.mrf.mxu0 }
  0xd8   : > { %v659_v45 = vpop.f32.mrf.mxu1 }
  0xd9   : > { %v283_v46 = vpop.f32.mrf.mxu0 }
  0xda   : > { %v299_v47 = vpop.f32.mrf.mxu1 }
  0xde   : > { %v664_v48 = vpop.f32.mrf.mxu1 }
  0xdf   : > { %v674_v49 = vpop.f32.mrf.mxu0  ;;  %v372_v50 = vadd.f32 %v664_v48, %v654_v40 }
  0xe0   : > { %v363_v52 = vpop.f32.mrf.mxu1 }
  0xe1   : > { %v453_v53 = vpop.f32.mrf.mxu0  ;;  %v486_v54 = vadd.f32 %v674_v49, %v372_v50  ;;  %v364_v55 = vadd.f32 %v363_v52, %v280_v42 }
  0xe2   : > { %v665_v56 = vpop.f32.mrf.mxu1 }
  0xe3   : > { %v675_v57 = vpop.f32.mrf.mxu0  ;;  %v501_v58 = vadd.f32 %v630_v51, %v486_v54  ;;  %v484_v59 = vadd.f32 %v453_v53, %v364_v55  ;;  %v375_v60 = vadd.f32 %v665_v56, %v655_v44 }
  0xe4   : > { %v366_v61 = vpop.f32.mrf.mxu1 }
  0xe5   : > { %v456_v62 = vpop.f32.mrf.mxu0  ;;  %v509_v63 = vmax.f32 %v501_v58, 0.0  ;;  %v499_v0 = vadd.f32 %v630_v51, %v484_v59  ;;  %v487_v1 = vadd.f32 %v675_v57, %v375_v60  ;;  %v367_v2 = vadd.f32 %v366_v61, %v283_v46 }
  0xe6   : > { %v668_v3 = vpop.f32.mrf.mxu1 }
  0xe7   : > { %v678_v4 = vpop.f32.mrf.mxu0  ;;  %518 = vst.msk [vmem:[#allocation3 + $0x10] sm:$0xff] %vm515_vm1, %v509_v63  ;;  %v507_v5 = vmax.f32 %v499_v0, 0.0  ;;  %v502_v6 = vadd.f32 %v630_v51, %v487_v1  ;;  %v485_v7 = vadd.f32 %v456_v62, %v367_v2  ;;  %v388_v8 = vadd.f32 %v668_v3, %v658_v41 }
  0xe8   : > { %v379_v9 = vpop.f32.mrf.mxu1 }
  0xe9   : > { %v469_v10 = vpop.f32.mrf.mxu0  ;;  %516 = vst.msk [vmem:[#allocation3] sm:$0xff] %vm515_vm1, %v507_v5  ;;  %v510_v11 = vmax.f32 %v502_v6, 0.0  ;;  %v500_v12 = vadd.f32 %v630_v51, %v485_v7  ;;  %v490_v13 = vadd.f32 %v678_v4, %v388_v8  ;;  %v380_v14 = vadd.f32 %v379_v9, %v296_v43 }
  0xea   : > { %v669_v15 = vpop.f32.mrf.mxu1 }
  0xeb   : > { %v679_v16 = vpop.f32.mrf.mxu0  ;;  %519 = vst.msk [vmem:[#allocation3 + $0x18] sm:$0xff] %vm515_vm1, %v510_v11  ;;  %v508_v17 = vmax.f32 %v500_v12, 0.0  ;;  %v505_v18 = vadd.f32 %v630_v51, %v490_v13  ;;  %v488_v19 = vadd.f32 %v469_v10, %v380_v14  ;;  %v391_v20 = vadd.f32 %v669_v15, %v659_v45 }
  0xec   : > { %v382_v21 = vpop.f32.mrf.mxu1 }
  0xed   : > { %517 = vst.msk [vmem:[#allocation3 + $0x8] sm:$0xff] %vm515_vm1, %v508_v17  ;;  %v513_v22 = vmax.f32 %v505_v18, 0.0  ;;  %v503_v23 = vadd.f32 %v630_v51, %v488_v19  ;;  %v491_v24 = vadd.f32 %v679_v16, %v391_v20  ;;  %v383_v25 = vadd.f32 %v382_v21, %v299_v47  ;;  %v472_v26 = vpop.f32.mrf.mxu0 }
  0xef   : > { %522 = vst.msk [vmem:[#allocation3 + $0x30] sm:$0xff] %vm515_vm1, %v513_v22  ;;  %v511_v27 = vmax.f32 %v503_v23, 0.0  ;;  %v506_v28 = vadd.f32 %v630_v51, %v491_v24  ;;  %v489_v29 = vadd.f32 %v472_v26, %v383_v25 }
  0xf1   : > { %520 = vst.msk [vmem:[#allocation3 + $0x20] sm:$0xff] %vm515_vm1, %v511_v27  ;;  %v514_v30 = vmax.f32 %v506_v28, 0.0  ;;  %v504_v31 = vadd.f32 %v630_v51, %v489_v29 }
  0xf2   : > { %v526_v32 = vld [vmem:[#allocation3 + $0x10] ss:$2 sm:$0xff]  ;;  %v534_v33 = vld [vmem:[#allocation3 + $0x11] ss:$2 sm:$0xff] }
  0xf3   : > { %v540_v34 = vmax.f32 %v526_v32, %v534_v33  ;;  %523 = vst.msk [vmem:[#allocation3 + $0x38] sm:$0xff] %vm515_vm1, %v514_v30  ;;  %v512_v35 = vmax.f32 %v504_v31, 0.0 }
  0xf4   : > { %v524_v36 = vld [vmem:[#allocation3] ss:$2 sm:$0xff]  ;;  %v532_v37 = vld [vmem:[#allocation3 + $0x1] ss:$2 sm:$0xff] }
  0xf5   : > { %544 = vst.msk [vmem:[%s170_s29 + $0x8] sm:$0xff] %vm515_vm1, %v540_v34  ;;  %v539_v38 = vmax.f32 %v524_v36, %v532_v37  ;;  %521 = vst.msk [vmem:[#allocation3 + $0x28] sm:$0xff] %vm515_vm1, %v512_v35 }
  0xf7   : > { %543 = vst.msk [vmem:[%s170_s29] sm:$0xff] %vm515_vm1, %v539_v38 }
  0xfa   : > { %v530_v39 = vld [vmem:[#allocation3 + $0x30] ss:$2 sm:$0xff]  ;;  %v538_v40 = vld [vmem:[#allocation3 + $0x31] ss:$2 sm:$0xff] }
  0xfb   : > { %v542_v41 = vmax.f32 %v530_v39, %v538_v40 }
  0xfc   : > { %v528_v42 = vld [vmem:[#allocation3 + $0x20] ss:$2 sm:$0xff]  ;;  %v536_v43 = vld [vmem:[#allocation3 + $0x21] ss:$2 sm:$0xff] }
  0xfd   : > { %546 = vst.msk [vmem:[%s170_s29 + $0x18] sm:$0xff] %vm515_vm1, %v542_v41  ;;  %v541_v44 = vmax.f32 %v528_v42, %v536_v43 }
  0xff   : > { %545 = vst.msk [vmem:[%s170_s29 + $0x10] sm:$0xff] %vm515_vm1, %v541_v44 }
 0x100 PF: > { %s13_s12 = sadd.s32 1, %s700_s12  }
 0x101   : > { %p10_p4 = scmp.ge.s32.totalorder %s13_s12, 4  }
 0x103   :  { %12 = sbr.rel (!%p10_p4) target bundleno = 1 (0x1), region = 71 }

// kernel: cnn1d_forward.5
= control target key start
LH: loop header
LB: loop body
LE: loop exit
PB: predicated region body
PF: predicated region fallthrough
CT: control target
= control target key end

     0   :  { %s996_s12 = smov 0   ;;  %s1198_s0 = inlined_call_operand.vmem [shape: f32[2,128,8], index: 0, kind: input, shape index: {}]   ;;  %s1199_s1 = inlined_call_operand.vmem [shape: bf16[3,8,16], index: 1, kind: input, shape index: {}]   ;;  %s1200_s2 = inlined_call_operand.vmem [shape: f32[1,16], index: 2, kind: input, shape index: {}]   ;;  %s1201_s3 = inlined_call_operand.vmem [shape: f32[2,64,16], index: 3, kind: output, shape index: {}]  }
   0x1 LB: > { %s831_s13 = sadd.s32 4294967295, %s973_s12   ;;  %p835_p0 = scmp.ge.s32.totalorder %s973_s12, 1  ;;  %s973_s12 = sphi %s996_s12, %s13_s12  }
   0x2   : > { %p137_p1 = scmp.lt.s32.totalorder %s973_s12, 3 }
   0x4   : > { %p138_p2 = pnand %p835_p0, %p137_p1 }
   0x5   : > { %p1009_p3 = scmp.lt.s32.totalorder (!%p138_p2), %s831_s13, 1 }
   0x6   : > { %141 = sbr.rel (%p138_p2) target bundleno = 278 (0x116), region = 32 }
   0xb   : > { %v840_v0 = vld [vmem:[%s1199_s1 + $0x4] sm:$0xf]  ;;  %vm298_vm0 = vcmask 1043456   ;;  %vm188_vm1 = vcmask 64512   ;;  %v975_v2 = vmov 0.0   ;;  %s1204_s13 = smov (!%p1009_p3, %s831_s13), 1 }
   0xc   : > { %955 = vmatprep.subr.msk.bf16.mxu1 %vm298_vm0, %v840_v0  ;;  %954 = vmatprep.subr.msk.bf16.mxu0 %vm298_vm0, %v840_v0  ;;  %v300_v1 = vsel %vm298_vm0, %v840_v0, 0  ;;  %190 = vst.msk [vmem:[#allocation2 + $0x8] sm:$0xff] %vm188_vm1, %v975_v2  ;;  %191 = vst.msk [vmem:[#allocation2 + $0x10] sm:$0xff] %vm188_vm1, %v975_v2  ;;  %v263_v3 = vld [vmem:[%s1199_s1] sm:$0xf]  ;;  %s869_s21 = sshll.u32 %s1204_s13, 7 }
   0xd   : > { %189 = vst.msk [vmem:[#allocation2] sm:$0xff] %vm188_vm1, %v975_v2  ;;  %192 = vst.msk [vmem:[#allocation2 + $0x18] sm:$0xff] %vm188_vm1, %v975_v2  ;;  %v857_v4 = vld [vmem:[%s1199_s1 + $0x8] sm:$0xf]  ;;  %953 = vmatpush3.bf16.msra.mxu1 %v300_v1  ;;  %899 = vmatpush3.bf16.msra.mxu0 %v300_v1  ;;  %s1052_s24 = scalar_lea.vmem %s1198_s0, %s869_s21  ;;  %v424_v19 = vsel %vm298_vm0, %v263_v3, 0  ;;  %vm712_vm2 = vcmask 130048  }
   0xe   : > { %193 = vst.msk [vmem:[#allocation2 + $0x20] sm:$0xff] %vm188_vm1, %v975_v2  ;;  %194 = vst.msk [vmem:[#allocation2 + $0x28] sm:$0xff] %vm188_vm1, %v975_v2  ;;  %956 = vmatprep.subr.msk.bf16.mxu1 %vm298_vm0, %v263_v3  ;;  %957 = vmatprep.subr.msk.bf16.mxu0 %vm298_vm0, %v857_v4  ;;  %v172_v5 = vld [vmem:[%s1052_s24] sm:$0xff]  ;;  %v173_v6 = vld [vmem:[%s1052_s24 + $0x8] sm:$0xff]  ;;  %v558_v16 = vsel %vm298_vm0, %v857_v4, 0  ;;  %s870_s27 = sshll.u32 %s1204_s13, 6 }
   0xf   : > { %195 = vst.msk [vmem:[#allocation2 + $0x30] sm:$0xff] %vm188_vm1, %v975_v2  ;;  %196 = vst.msk [vmem:[#allocation2 + $0x38] sm:$0xff] %vm188_vm1, %v975_v2  ;;  %v180_v7 = vld [vmem:[%s1052_s24 + $0x40] sm:$0xff]  ;;  %v264_v8 = vpack.c.bf16 %v173_v6, %v172_v5  ;;  %v181_v9 = vld [vmem:[%s1052_s24 + $0x48] sm:$0xff]  ;;  %s1153_s30 = scalar_lea.vmem %s1201_s3, %s870_s27 }
  0x10   : > { %197 = vst.msk [vmem:[#allocation2 + $0x40] sm:$0xff] %vm188_vm1, %v975_v2  ;;  %198 = vst.msk [vmem:[#allocation2 + $0x48] sm:$0xff] %vm188_vm1, %v975_v2  ;;  %v174_v10 = vld [vmem:[%s1052_s24 + $0x10] sm:$0xff]  ;;  %v175_v11 = vld [vmem:[%s1052_s24 + $0x18] sm:$0xff]  ;;  %v268_v12 = vpack.c.bf16 %v181_v9, %v180_v7 }
  0x11   : > { %199 = vst.msk [vmem:[#allocation2 + $0x50] sm:$0xff] %vm188_vm1, %v975_v2  ;;  %200 = vst.msk [vmem:[#allocation2 + $0x58] sm:$0xff] %vm188_vm1, %v975_v2  ;;  %v265_v13 = vpack.c.bf16 %v175_v11, %v174_v10  ;;  %v182_v14 = vld [vmem:[%s1052_s24 + $0x50] sm:$0xff]  ;;  %v183_v15 = vld [vmem:[%s1052_s24 + $0x58] sm:$0xff]  ;;  %900 = vmatprep.mubr.msk.bf16.mxu0 %vm188_vm1, %v264_v8 }
  0x12   : > { %201 = vst.msk [vmem:[#allocation2 + $0x60] sm:$0xff] %vm188_vm1, %v975_v2  ;;  %202 = vst.msk [vmem:[#allocation2 + $0x68] sm:$0xff] %vm188_vm1, %v975_v2  ;;  %v176_v17 = vld [vmem:[%s1052_s24 + $0x20] sm:$0xff]  ;;  %v269_v18 = vpack.c.bf16 %v183_v15, %v182_v14  ;;  %v177_v20 = vld [vmem:[%s1052_s24 + $0x28] sm:$0xff]  ;;  %908 = vmatprep.mubr.msk.bf16.mxu1 %vm188_vm1, %v268_v12 }
  0x13   : > { %203 = vst.msk [vmem:[#allocation2 + $0x70] sm:$0xff] %vm188_vm1, %v975_v2  ;;  %204 = vst.msk [vmem:[#allocation2 + $0x78] sm:$0xff] %vm188_vm1, %v975_v2  ;;  %v184_v21 = vld [vmem:[%s1052_s24 + $0x60] sm:$0xff]  ;;  %v185_v22 = vld [vmem:[%s1052_s24 + $0x68] sm:$0xff]  ;;  %901 = vmatmul.mubr.msk.bf16.vlgmr.msra.gmra.mxu0 %vm188_vm1, %v265_v13  ;;  %v266_v23 = vpack.c.bf16 %v177_v20, %v176_v17 }
  0x14   : > { %205 = vst.msk [vmem:[#allocation2 + $0x80] sm:$0xff] %vm188_vm1, %v975_v2  ;;  %206 = vst.msk [vmem:[#allocation2 + $0x88] sm:$0xff] %vm188_vm1, %v975_v2  ;;  %v270_v24 = vpack.c.bf16 %v185_v22, %v184_v21  ;;  %v178_v25 = vld [vmem:[%s1052_s24 + $0x30] sm:$0xff]  ;;  %v179_v26 = vld [vmem:[%s1052_s24 + $0x38] sm:$0xff]  ;;  %909 = vmatmul.mubr.msk.bf16.vlgmr.msra.gmra.mxu1 %vm188_vm1, %v269_v18  ;;  %935 = vmatpush3.bf16.msra.mxu0 %v558_v16 }
  0x15   : > { %207 = vst.msk [vmem:[#allocation2 + $0x8] sm:$0xff] %vm188_vm1, %v172_v5  ;;  %208 = vst.msk [vmem:[#allocation2 + $0x10] sm:$0xff] %vm188_vm1, %v173_v6  ;;  %v186_v27 = vld [vmem:[%s1052_s24 + $0x70] sm:$0xff]  ;;  %v187_v28 = vld [vmem:[%s1052_s24 + $0x78] sm:$0xff]  ;;  %917 = vmatpush3.bf16.msra.mxu1 %v424_v19  ;;  %904 = vmatprep.mubr.msk.bf16.mxu0 %vm188_vm1, %v266_v23  ;;  %v267_v29 = vpack.c.bf16 %v179_v26, %v178_v25 }
  0x16   : > { %215 = vst.msk [vmem:[#allocation2 + $0x48] sm:$0xff] %vm188_vm1, %v180_v7  ;;  %216 = vst.msk [vmem:[#allocation2 + $0x50] sm:$0xff] %vm188_vm1, %v181_v9  ;;  %912 = vmatprep.mubr.msk.bf16.mxu1 %vm188_vm1, %v270_v24  ;;  %v271_v33 = vpack.c.bf16 %v187_v28, %v186_v27 }
  0x17   : > { %209 = vst.msk [vmem:[#allocation2 + $0x18] sm:$0xff] %vm188_vm1, %v174_v10  ;;  %210 = vst.msk [vmem:[#allocation2 + $0x20] sm:$0xff] %vm188_vm1, %v175_v11 }
  0x18   : > { %217 = vst.msk [vmem:[#allocation2 + $0x58] sm:$0xff] %vm188_vm1, %v182_v14  ;;  %218 = vst.msk [vmem:[#allocation2 + $0x60] sm:$0xff] %vm188_vm1, %v183_v15 }
  0x19   : > { %211 = vst.msk [vmem:[#allocation2 + $0x28] sm:$0xff] %vm188_vm1, %v176_v17  ;;  %212 = vst.msk [vmem:[#allocation2 + $0x30] sm:$0xff] %vm188_vm1, %v177_v20 }
  0x1a   : > { %219 = vst.msk [vmem:[#allocation2 + $0x68] sm:$0xff] %vm188_vm1, %v184_v21  ;;  %220 = vst.msk [vmem:[#allocation2 + $0x70] sm:$0xff] %vm188_vm1, %v185_v22 }
  0x1b   : > { %213 = vst.msk [vmem:[#allocation2 + $0x38] sm:$0xff] %vm188_vm1, %v178_v25  ;;  %214 = vst.msk [vmem:[#allocation2 + $0x40] sm:$0xff] %vm188_vm1, %v179_v26  ;;  %905 = vmatmul.mubr.msk.bf16.gmra.mxu0 %vm188_vm1, %v267_v29 }
  0x1c   : > { %221 = vst.msk [vmem:[#allocation2 + $0x78] sm:$0xff] %vm188_vm1, %v186_v27  ;;  %222 = vst.msk [vmem:[#allocation2 + $0x80] sm:$0xff] %vm188_vm1, %v187_v28  ;;  %v223_v30 = vld [vmem:[#allocation2 + $0x7] sm:$0xff]  ;;  %v224_v31 = vld [vmem:[#allocation2 + $0xf] sm:$0xff]  ;;  %913 = vmatmul.mubr.msk.bf16.gmra.mxu1 %vm188_vm1, %v271_v33 }
  0x1d   : > { %v239_v32 = vld [vmem:[#allocation2 + $0x9] sm:$0xff]  ;;  %v255_v35 = vpack.c.bf16 %v224_v31, %v223_v30 }
  0x1e   : > { %v240_v34 = vld [vmem:[#allocation2 + $0x11] sm:$0xff]  ;;  %v241_v38 = vld [vmem:[#allocation2 + $0x19] sm:$0xff]  ;;  %v247_v53 = vld [vmem:[#allocation2 + $0x49] sm:$0xff] }
  0x1f   : > { %v523_v36 = vpack.c.bf16 %v240_v34, %v239_v32  ;;  %v225_v37 = vld [vmem:[#allocation2 + $0x17] sm:$0xff]  ;;  %918 = vmatprep.mubr.msk.bf16.mxu1 %vm188_vm1, %v255_v35  ;;  %v226_v40 = vld [vmem:[#allocation2 + $0x1f] sm:$0xff]  ;;  %v232_v56 = vld [vmem:[#allocation2 + $0x4f] sm:$0xff] }
  0x20   : > { %v242_v39 = vld [vmem:[#allocation2 + $0x21] sm:$0xff]  ;;  %v243_v41 = vld [vmem:[#allocation2 + $0x29] sm:$0xff]  ;;  %v256_v46 = vpack.c.bf16 %v226_v40, %v225_v37  ;;  %v248_v54 = vld [vmem:[#allocation2 + $0x51] sm:$0xff] }
  0x21   : > { %936 = vmatprep.mubr.msk.bf16.mxu0 %vm188_vm1, %v523_v36  ;;  %v227_v43 = vld [vmem:[#allocation2 + $0x27] sm:$0xff]  ;;  %v228_v44 = vld [vmem:[#allocation2 + $0x2f] sm:$0xff]  ;;  %v524_v45 = vpack.c.bf16 %v242_v39, %v241_v38  ;;  %v527_v59 = vpack.c.bf16 %v248_v54, %v247_v53  ;;  %v233_v61 = vld [vmem:[#allocation2 + $0x57] sm:$0xff] }
  0x22   : > { %v244_v42 = vld [vmem:[#allocation2 + $0x31] sm:$0xff]  ;;  %v257_v48 = vpack.c.bf16 %v228_v44, %v227_v43  ;;  %v245_v50 = vld [vmem:[#allocation2 + $0x39] sm:$0xff]  ;;  %v246_v51 = vld [vmem:[#allocation2 + $0x41] sm:$0xff] }
  0x23   : > { %v525_v47 = vpack.c.bf16 %v244_v42, %v243_v41  ;;  %937 = vmatmul.mubr.msk.bf16.vlgmr.msra.gmra.mxu0 %vm188_vm1, %v524_v45  ;;  %v229_v49 = vld [vmem:[#allocation2 + $0x37] sm:$0xff]  ;;  %v230_v52 = vld [vmem:[#allocation2 + $0x3f] sm:$0xff]  ;;  %v231_v55 = vld [vmem:[#allocation2 + $0x47] sm:$0xff]  ;;  %v526_v57 = vpack.c.bf16 %v246_v51, %v245_v50 }
  0x24   : > { %919 = vmatmul.mubr.msk.bf16.vlgmr.msra.gmra.mxu1 %vm188_vm1, %v256_v46  ;;  %v258_v58 = vpack.c.bf16 %v230_v52, %v229_v49  ;;  %v259_v60 = vpack.c.bf16 %v232_v56, %v231_v55  ;;  %v249_v62 = vld [vmem:[#allocation2 + $0x59] sm:$0xff]  ;;  %v250_v63 = vld [vmem:[#allocation2 + $0x61] sm:$0xff]  ;;  %v251_v1 = vld [vmem:[#allocation2 + $0x69] sm:$0xff] }
  0x25   : > { %940 = vmatprep.mubr.msk.bf16.mxu0 %vm188_vm1, %v525_v47  ;;  %922 = vmatprep.mubr.msk.bf16.mxu1 %vm188_vm1, %v257_v48  ;;  %v234_v0 = vld [vmem:[#allocation2 + $0x5f] sm:$0xff]  ;;  %v252_v2 = vld [vmem:[#allocation2 + $0x71] sm:$0xff]  ;;  %v235_v3 = vld [vmem:[#allocation2 + $0x67] sm:$0xff]  ;;  %v528_v5 = vpack.c.bf16 %v250_v63, %v249_v62 }
  0x26   : > { %v236_v4 = vld [vmem:[#allocation2 + $0x6f] sm:$0xff]  ;;  %v260_v6 = vpack.c.bf16 %v234_v0, %v233_v61  ;;  %v529_v7 = vpack.c.bf16 %v252_v2, %v251_v1  ;;  %v253_v9 = vld [vmem:[#allocation2 + $0x79] sm:$0xff]  ;;  %v254_v10 = vld [vmem:[#allocation2 + $0x81] sm:$0xff] }
  0x27   : > { %v261_v8 = vpack.c.bf16 %v236_v4, %v235_v3  ;;  %v237_v11 = vld [vmem:[#allocation2 + $0x77] sm:$0xff]  ;;  %v238_v12 = vld [vmem:[#allocation2 + $0x7f] sm:$0xff]  ;;  %v530_v13 = vpack.c.bf16 %v254_v10, %v253_v9 }
  0x28   : > { %v262_v14 = vpack.c.bf16 %v238_v12, %v237_v11  ;;  %v1131_v35 = vld [vmem:[%s1200_s2] ss:$0 sm:$0xff] }
  0x2b   : > { %941 = vmatmul.mubr.msk.bf16.gmra.mxu0 %vm188_vm1, %v526_v57 }
  0x2c   : > { %923 = vmatmul.mubr.msk.bf16.gmra.mxu1 %vm188_vm1, %v258_v58  ;;  %944 = vmatprep.mubr.msk.bf16.mxu0 %vm188_vm1, %v527_v59 }
  0x2d   : > { %926 = vmatprep.mubr.msk.bf16.mxu1 %vm188_vm1, %v259_v60 }
  0x33   : > { %945 = vmatmul.mubr.msk.bf16.gmra.mxu0 %vm188_vm1, %v528_v5 }
  0x34   : > { %927 = vmatmul.mubr.msk.bf16.gmra.mxu1 %vm188_vm1, %v260_v6  ;;  %948 = vmatprep.mubr.msk.bf16.mxu0 %vm188_vm1, %v529_v7 }
  0x35   : > { %930 = vmatprep.mubr.msk.bf16.mxu1 %vm188_vm1, %v261_v8 }
  0x3b   : > { %949 = vmatmul.mubr.msk.bf16.gmra.mxu0 %vm188_vm1, %v530_v13 }
  0x3c   : > { %931 = vmatmul.mubr.msk.bf16.gmra.mxu1 %vm188_vm1, %v262_v14 }
  0xd3   : > { %v902_v15 = vpop.f32.mrf.mxu0 }
  0xd4   : > { %v1112_v16 = vpop.f32.mrf.mxu1 }
  0xd5   : > { %v336_v17 = vpop.f32.mrf.mxu0 }
  0xd6   : > { %v1114_v18 = vpop.f32.mrf.mxu1 }
  0xd7   : > { %v903_v19 = vpop.f32.mrf.mxu0 }
  0xd8   : > { %v1116_v20 = vpop.f32.mrf.mxu1 }
  0xd9   : > { %v339_v21 = vpop.f32.mrf.mxu0 }
  0xda   : > { %v1118_v22 = vpop.f32.mrf.mxu1 }
  0xdb   : > { %v906_v23 = vpop.f32.mrf.mxu0 }
  0xdc   : > { %v1120_v24 = vpop.f32.mrf.mxu1 }
  0xdd   : > { %v352_v25 = vpop.f32.mrf.mxu0 }
  0xde   : > { %v1122_v26 = vpop.f32.mrf.mxu1 }
  0xdf   : > { %v907_v27 = vpop.f32.mrf.mxu0 }
  0xe0   : > { %v1124_v28 = vpop.f32.mrf.mxu1 }
  0xe1   : > { %v355_v29 = vpop.f32.mrf.mxu0 }
  0xe2   : > { %v1126_v30 = vpop.f32.mrf.mxu1 }
  0xe3   : > { %v938_v31 = vpop.f32.mrf.mxu0 }
  0xe4   : > { %v920_v32 = vpop.f32.mrf.mxu1 }
  0xe5   : > { %v469_v33 = vadd.f32 %v920_v32, %v902_v15  ;;  %v594_v34 = vpop.f32.mrf.mxu0 }
  0xe6   : > { %v460_v36 = vpop.f32.mrf.mxu1 }
  0xe7   : > { %v659_v37 = vadd.f32 %v938_v31, %v469_v33  ;;  %v461_v38 = vadd.f32 %v460_v36, %v336_v17  ;;  %v939_v39 = vpop.f32.mrf.mxu0 }
  0xe8   : > { %v921_v40 = vpop.f32.mrf.mxu1 }
  0xe9   : > { %v682_v41 = vadd.f32 %v1131_v35, %v659_v37  ;;  %v657_v42 = vadd.f32 %v594_v34, %v461_v38  ;;  %v472_v43 = vadd.f32 %v921_v40, %v903_v19  ;;  %v597_v44 = vpop.f32.mrf.mxu0 }
  0xea   : > { %v463_v45 = vpop.f32.mrf.mxu1 }
  0xeb   : > { %v698_v46 = vmax.f32 %v682_v41, 0.0  ;;  %v680_v47 = vadd.f32 %v1131_v35, %v657_v42  ;;  %v660_v48 = vadd.f32 %v939_v39, %v472_v43  ;;  %v464_v49 = vadd.f32 %v463_v45, %v339_v21  ;;  %v942_v50 = vpop.f32.mrf.mxu0 }
  0xec   : > { %v924_v51 = vpop.f32.mrf.mxu1 }
  0xed   : > { %715 = vst.msk [vmem:[#allocation3 + $0x10] sm:$0xff] %vm712_vm2, %v698_v46  ;;  %v696_v52 = vmax.f32 %v680_v47, 0.0  ;;  %v683_v53 = vadd.f32 %v1131_v35, %v660_v48  ;;  %v658_v54 = vadd.f32 %v597_v44, %v464_v49  ;;  %v485_v55 = vadd.f32 %v924_v51, %v906_v23  ;;  %v610_v56 = vpop.f32.mrf.mxu0 }
  0xee   : > { %v476_v57 = vpop.f32.mrf.mxu1 }
  0xef   : > { %713 = vst.msk [vmem:[#allocation3] sm:$0xff] %vm712_vm2, %v696_v52  ;;  %v699_v58 = vmax.f32 %v683_v53, 0.0  ;;  %v681_v59 = vadd.f32 %v1131_v35, %v658_v54  ;;  %v663_v60 = vadd.f32 %v942_v50, %v485_v55  ;;  %v477_v61 = vadd.f32 %v476_v57, %v352_v25  ;;  %v943_v62 = vpop.f32.mrf.mxu0 }
  0xf0   : > { %v925_v63 = vpop.f32.mrf.mxu1 }
  0xf1   : > { %716 = vst.msk [vmem:[#allocation3 + $0x18] sm:$0xff] %vm712_vm2, %v699_v58  ;;  %v697_v0 = vmax.f32 %v681_v59, 0.0  ;;  %v686_v1 = vadd.f32 %v1131_v35, %v663_v60  ;;  %v661_v2 = vadd.f32 %v610_v56, %v477_v61  ;;  %v488_v3 = vadd.f32 %v925_v63, %v907_v27  ;;  %v613_v4 = vpop.f32.mrf.mxu0 }
  0xf2   : > { %v479_v5 = vpop.f32.mrf.mxu1 }
  0xf3   : > { %714 = vst.msk [vmem:[#allocation3 + $0x8] sm:$0xff] %vm712_vm2, %v697_v0  ;;  %v702_v6 = vmax.f32 %v686_v1, 0.0  ;;  %v684_v7 = vadd.f32 %v1131_v35, %v661_v2  ;;  %v664_v8 = vadd.f32 %v943_v62, %v488_v3  ;;  %v480_v9 = vadd.f32 %v479_v5, %v355_v29  ;;  %v946_v10 = vpop.f32.mrf.mxu0 }
  0xf4   : > { %v928_v11 = vpop.f32.mrf.mxu1 }
  0xf5   : > { %719 = vst.msk [vmem:[#allocation3 + $0x30] sm:$0xff] %vm712_vm2, %v702_v6  ;;  %v700_v12 = vmax.f32 %v684_v7, 0.0  ;;  %v687_v13 = vadd.f32 %v1131_v35, %v664_v8  ;;  %v662_v14 = vadd.f32 %v613_v4, %v480_v9  ;;  %v501_v15 = vadd.f32 %v928_v11, %v1112_v16  ;;  %v626_v17 = vpop.f32.mrf.mxu0 }
  0xf6   : > { %v492_v19 = vpop.f32.mrf.mxu1 }
  0xf7   : > { %717 = vst.msk [vmem:[#allocation3 + $0x20] sm:$0xff] %vm712_vm2, %v700_v12  ;;  %v703_v21 = vmax.f32 %v687_v13, 0.0  ;;  %v685_v23 = vadd.f32 %v1131_v35, %v662_v14  ;;  %v667_v25 = vadd.f32 %v946_v10, %v501_v15  ;;  %v493_v27 = vadd.f32 %v492_v19, %v1114_v18  ;;  %v947_v29 = vpop.f32.mrf.mxu0 }
  0xf8   : > { %v731_v31 = vld [vmem:[#allocation3 + $0x10] ss:$2 sm:$0xff]  ;;  %v747_v32 = vld [vmem:[#allocation3 + $0x11] ss:$2 sm:$0xff]  ;;  %v929_v16 = vpop.f32.mrf.mxu1 }
  0xf9   : > { %v761_v33 = vmax.f32 %v731_v31, %v747_v32  ;;  %720 = vst.msk [vmem:[#allocation3 + $0x38] sm:$0xff] %vm712_vm2, %v703_v21  ;;  %v701_v34 = vmax.f32 %v685_v23, 0.0  ;;  %v690_v36 = vadd.f32 %v1131_v35, %v667_v25  ;;  %v665_v37 = vadd.f32 %v626_v17, %v493_v27  ;;  %v629_v38 = vpop.f32.mrf.mxu0 }
  0xfa   : > { %v729_v18 = vld [vmem:[#allocation3] ss:$2 sm:$0xff]  ;;  %v745_v39 = vld [vmem:[#allocation3 + $0x1] ss:$2 sm:$0xff]  ;;  %v504_v40 = vadd.f32 %v929_v16, %v1116_v20  ;;  %v495_v41 = vpop.f32.mrf.mxu1 }
  0xfb   : > { %769 = vst.msk [vmem:[%s1153_s30 + $0x8] sm:$0xff] %vm712_vm2, %v761_v33  ;;  %v760_v42 = vmax.f32 %v729_v18, %v745_v39  ;;  %718 = vst.msk [vmem:[#allocation3 + $0x28] sm:$0xff] %vm712_vm2, %v701_v34  ;;  %v706_v43 = vmax.f32 %v690_v36, 0.0  ;;  %v688_v44 = vadd.f32 %v1131_v35, %v665_v37  ;;  %v496_v45 = vadd.f32 %v495_v41, %v1118_v22  ;;  %v950_v46 = vpop.f32.mrf.mxu0 }
  0xfc   : > { %v668_v47 = vadd.f32 %v947_v29, %v504_v40  ;;  %v932_v48 = vpop.f32.mrf.mxu1 }
  0xfd   : > { %768 = vst.msk [vmem:[%s1153_s30] sm:$0xff] %vm712_vm2, %v760_v42  ;;  %723 = vst.msk [vmem:[#allocation3 + $0x50] sm:$0xff] %vm712_vm2, %v706_v43  ;;  %v704_v49 = vmax.f32 %v688_v44, 0.0  ;;  %v666_v20 = vadd.f32 %v629_v38, %v496_v45  ;;  %v517_v50 = vadd.f32 %v932_v48, %v1120_v24  ;;  %v642_v51 = vpop.f32.mrf.mxu0 }
  0xfe   : > { %v691_v52 = vadd.f32 %v1131_v35, %v668_v47  ;;  %v508_v53 = vpop.f32.mrf.mxu1 }
  0xff   : > { %721 = vst.msk [vmem:[#allocation3 + $0x40] sm:$0xff] %vm712_vm2, %v704_v49  ;;  %v689_v54 = vadd.f32 %v1131_v35, %v666_v20  ;;  %v671_v22 = vadd.f32 %v950_v46, %v517_v50  ;;  %v509_v55 = vadd.f32 %v508_v53, %v1122_v26  ;;  %v951_v60 = vpop.f32.mrf.mxu0 }
 0x100   : > { %v735_v56 = vld [vmem:[#allocation3 + $0x30] ss:$2 sm:$0xff]  ;;  %v751_v57 = vld [vmem:[#allocation3 + $0x31] ss:$2 sm:$0xff]  ;;  %v707_v58 = vmax.f32 %v691_v52, 0.0  ;;  %v933_v59 = vpop.f32.mrf.mxu1 }
 0x101   : > { %v763_v61 = vmax.f32 %v735_v56, %v751_v57  ;;  %v705_v62 = vmax.f32 %v689_v54, 0.0  ;;  %v694_v24 = vadd.f32 %v1131_v35, %v671_v22  ;;  %v669_v63 = vadd.f32 %v642_v51, %v509_v55  ;;  %v645_v8 = vpop.f32.mrf.mxu0 }
 0x102   : > { %v733_v0 = vld [vmem:[#allocation3 + $0x20] ss:$2 sm:$0xff]  ;;  %v749_v1 = vld [vmem:[#allocation3 + $0x21] ss:$2 sm:$0xff]  ;;  %724 = vst.msk [vmem:[#allocation3 + $0x58] sm:$0xff] %vm712_vm2, %v707_v58  ;;  %v520_v2 = vadd.f32 %v933_v59, %v1124_v28  ;;  %v511_v3 = vpop.f32.mrf.mxu1 }
 0x103   : > { %771 = vst.msk [vmem:[%s1153_s30 + $0x18] sm:$0xff] %vm712_vm2, %v763_v61  ;;  %v762_v26 = vmax.f32 %v733_v0, %v749_v1  ;;  %722 = vst.msk [vmem:[#allocation3 + $0x48] sm:$0xff] %vm712_vm2, %v705_v62  ;;  %v710_v4 = vmax.f32 %v694_v24, 0.0  ;;  %v692_v5 = vadd.f32 %v1131_v35, %v669_v63  ;;  %v512_v6 = vadd.f32 %v511_v3, %v1126_v30 }
 0x104   : > { %v672_v7 = vadd.f32 %v951_v60, %v520_v2 }
 0x105   : > { %770 = vst.msk [vmem:[%s1153_s30 + $0x10] sm:$0xff] %vm712_vm2, %v762_v26  ;;  %727 = vst.msk [vmem:[#allocation3 + $0x70] sm:$0xff] %vm712_vm2, %v710_v4  ;;  %v708_v9 = vmax.f32 %v692_v5, 0.0  ;;  %v670_v28 = vadd.f32 %v645_v8, %v512_v6 }
 0x106   : > { %v695_v10 = vadd.f32 %v1131_v35, %v672_v7 }
 0x107   : > { %725 = vst.msk [vmem:[#allocation3 + $0x60] sm:$0xff] %vm712_vm2, %v708_v9  ;;  %v693_v11 = vadd.f32 %v1131_v35, %v670_v28 }
 0x108   : > { %v711_v12 = vmax.f32 %v695_v10, 0.0 }
 0x109   : > { %v739_v13 = vld [vmem:[#allocation3 + $0x50] ss:$2 sm:$0xff]  ;;  %v755_v14 = vld [vmem:[#allocation3 + $0x51] ss:$2 sm:$0xff]  ;;  %v709_v30 = vmax.f32 %v693_v11, 0.0 }
 0x10a   : > { %v765_v15 = vmax.f32 %v739_v13, %v755_v14  ;;  %v737_v17 = vld [vmem:[#allocation3 + $0x40] ss:$2 sm:$0xff]  ;;  %v753_v19 = vld [vmem:[#allocation3 + $0x41] ss:$2 sm:$0xff]  ;;  %728 = vst.msk [vmem:[#allocation3 + $0x78] sm:$0xff] %vm712_vm2, %v711_v12 }
 0x10b   : > { %v764_v21 = vmax.f32 %v737_v17, %v753_v19  ;;  %726 = vst.msk [vmem:[#allocation3 + $0x68] sm:$0xff] %vm712_vm2, %v709_v30 }
 0x10c   : > { %773 = vst.msk [vmem:[%s1153_s30 + $0x28] sm:$0xff] %vm712_vm2, %v765_v15 }
 0x10d   : > { %772 = vst.msk [vmem:[%s1153_s30 + $0x20] sm:$0xff] %vm712_vm2, %v764_v21 }
 0x111   : > { %v743_v23 = vld [vmem:[#allocation3 + $0x70] ss:$2 sm:$0xff]  ;;  %v759_v35 = vld [vmem:[#allocation3 + $0x71] ss:$2 sm:$0xff] }
 0x112   : > { %v767_v25 = vmax.f32 %v743_v23, %v759_v35  ;;  %v741_v27 = vld [vmem:[#allocation3 + $0x60] ss:$2 sm:$0xff]  ;;  %v757_v29 = vld [vmem:[#allocation3 + $0x61] ss:$2 sm:$0xff] }
 0x113   : > { %v766_v31 = vmax.f32 %v741_v27, %v757_v29 }
 0x114   : > { %775 = vst.msk [vmem:[%s1153_s30 + $0x38] sm:$0xff] %vm712_vm2, %v767_v25 }
 0x115   : > { %774 = vst.msk [vmem:[%s1153_s30 + $0x30] sm:$0xff] %vm712_vm2, %v766_v31 }
 0x116 PF: > { %s13_s12 = sadd.s32 1, %s973_s12  }
 0x117   : > { %p10_p4 = scmp.ge.s32.totalorder %s13_s12, 4  }
 0x119   :  { %12 = sbr.rel (!%p10_p4) target bundleno = 1 (0x1), region = 79 }

// kernel: cnn1d_forward.9
= control target key start
LH: loop header
LB: loop body
LE: loop exit
PB: predicated region body
PF: predicated region fallthrough
CT: control target
= control target key end

     0   :  { %v204_v0 = vmov 0.0   ;;  %vm205_vm0 = vmmov 0   ;;  %s259_s1 = inlined_call_operand.vmem [shape: bf16[128,128], index: 1, kind: input, shape index: {}]   ;;  %s260_s0 = inlined_call_operand.vmem [shape: bf16[8,128], index: 0, kind: input, shape index: {}]   ;;  %s261_s2 = inlined_call_operand.vmem [shape: f32[1,128], index: 2, kind: input, shape index: {}]   ;;  %s262_s3 = inlined_call_operand.vmem [shape: f32[8,128], index: 3, kind: output, shape index: {}]  }
   0x1   :  { %170 = vmatprep.subr.bf16.mxu0 %v204_v0  ;;  %v192_v1 = vld [vmem:[%s259_s1 + $0x38] sm:$0xff]   ;;  %186 = vmatprep.mubr.msk.bf16.mxu0 %vm205_vm0, %v204_v0  ;;  %v193_v2 = vld [vmem:[%s259_s1 + $0x30] sm:$0xff]   ;;  %v194_v3 = vld [vmem:[%s259_s1 + $0x28] sm:$0xff]  }
   0x2   :  { %171 = vmatpush3.bf16.msra.mxu0 %v192_v1  ;;  %v195_v4 = vld [vmem:[%s259_s1 + $0x20] sm:$0xff]   ;;  %v196_v5 = vld [vmem:[%s259_s1 + $0x18] sm:$0xff]   ;;  %v197_v6 = vld [vmem:[%s259_s1 + $0x10] sm:$0xff]  }
   0x3   :  { %172 = vmatprep.subr.bf16.mxu0 %v204_v0  ;;  %v198_v7 = vld [vmem:[%s259_s1 + $0x8] sm:$0xff]   ;;  %v199_v8 = vld [vmem:[%s259_s1] sm:$0xff]  }
   0x4   :  { %v21_v9 = vld [vmem:[%s260_s0] sm:$0xf] }
   0x5   :  { %v159_v10 = vld [vmem:[%s261_s2] ss:$0 sm:$0xff] }
   0x6   :  { %173 = vmatpush3.bf16.msra.mxu0 %v193_v2 }
   0x7   :  { %174 = vmatprep.subr.bf16.mxu0 %v204_v0 }
   0xa   :  { %175 = vmatpush3.bf16.msra.mxu0 %v194_v3 }
   0xb   :  { %176 = vmatprep.subr.bf16.mxu0 %v204_v0 }
   0xe   :  { %177 = vmatpush3.bf16.msra.mxu0 %v195_v4 }
   0xf   :  { %178 = vmatprep.subr.bf16.mxu0 %v204_v0 }
  0x12   :  { %179 = vmatpush3.bf16.msra.mxu0 %v196_v5 }
  0x13   :  { %180 = vmatprep.subr.bf16.mxu0 %v204_v0 }
  0x16   :  { %181 = vmatpush3.bf16.msra.mxu0 %v197_v6 }
  0x17   :  { %182 = vmatprep.subr.bf16.mxu0 %v204_v0 }
  0x1a   :  { %183 = vmatpush3.bf16.msra.mxu0 %v198_v7 }
  0x1b   :  { %184 = vmatprep.subr.bf16.mxu0 %v204_v0 }
  0x1e   :  { %185 = vmatpush3.bf16.msra.mxu0 %v199_v8 }
  0x21   :  { %187 = vmatmul.mubr.bf16.vlgmr.msra.gmra.mxu0 %v21_v9 }
  0xe1   :  { %v120_v11 = vpop.f32.mrf.mxu0 }
  0xe2   :  { %v139_v12 = vadd.f32 %v159_v10, %v120_v11 }
  0xe3   :  { %v188_v13 = vpop.f32.mrf.mxu0 }
  0xe4   :  { %v160_v14 = vmul.f32 -1.442695, %v139_v12 }
  0xe5   :  { %v123_v15 = vpop.f32.mrf.mxu0 }
  0xe6   :  { %200 = vpow2.f32 %v160_v14 }
  0xe7   :  { %v189_v16 = vpop.f32.mrf.mxu0 }
  0xf3   :  { %v201_v17 = vpop.eup %200 }
  0xf4   :  { %v143_v18 = vadd.f32 1.0, %v201_v17 }
  0xf6   :  { %202 = vrcp.f32 %v143_v18 }
 0x103   :  { %v203_v19 = vpop.eup %202 }
 0x104   :  { %146 = vst [vmem:[%s262_s3] sm:$0xff] %v203_v19 }

// kernel: cnn1d_forward.8
= control target key start
LH: loop header
LB: loop body
LE: loop exit
PB: predicated region body
PF: predicated region fallthrough
CT: control target
= control target key end

     0   :  { %s941_s12 = smov 0   ;;  %s943_s13 = smov 0   ;;  %s1024_s0 = inlined_call_operand.vmem [shape: bf16[8,1024], index: 0, kind: input, shape index: {}]   ;;  %s1025_s1 = inlined_call_operand.vmem [shape: bf16[1024,128], index: 1, kind: input, shape index: {}]   ;;  %s1026_s2 = inlined_call_operand.vmem [shape: f32[1,128], index: 2, kind: input, shape index: {}]   ;;  %s1027_s3 = inlined_call_operand.vmem [shape: f32[8,128], index: 3, kind: output, shape index: {}]  }
   0x1   :  { %s945_s14 = smov 0  }
   0x2 LB: > { %s25_s15 = sadd.s32 1, %s914_s13  ;;  %p744_p0 = scmp.ge.s32.totalorder %s918_s14, 1  ;;  %s918_s14 = sphi %s945_s14, %s13_s14   ;;  %s914_s13 = sphi %s943_s13, %s1029_s13   ;;  %s910_s12 = sphi %s941_s12, %s1028_s12  }
   0x3   : > { %p26_p1 = scmp.ge.s32.totalorder %s25_s15, 2  ;;  %p189_p2 = scmp.lt.s32.totalorder %s918_s14, 3 }
   0x5   : > { %s1031_s15 = smov (%p26_p1, %s25_s15), 0  ;;  %p190_p3 = pnand %p744_p0, %p189_p2 }
   0x6   : > { %s745_s16 = sshll.u32 (!%p190_p3), %s910_s12, 2  ;;  %s747_s17 = sshll.u32 (!%p190_p3), %s910_s12, 6 }
   0x7   : > { %193 = sbr.rel (%p190_p3) target bundleno = 271 (0x10f), region = 32  ;;  %p233_p4 = scmp.lt.s32.totalorder (!%p190_p3), %s745_s16, 7 }
   0x8   : > { %p241_p5 = scmp.lt.s32.totalorder (!%p190_p3), %s747_s17, 127  ;;  %p749_p6 = scmp.ne.s32.totalorder (!%p190_p3), %s910_s12, 0 }
   0xc   : > { %s1033_s16 = smov (!%p233_p4, %s745_s16), 7  ;;  %s1035_s17 = smov (!%p241_p5, %s747_s17), 127 }
   0xd   : > { %s746_s18 = sshll.u32 %s1033_s16, 2  ;;  %s748_s22 = sshll.u32 %s1035_s17, 2 }
   0xe   : > { %s966_s21 = scalar_lea.vmem %s1024_s0, %s746_s18  ;;  %s971_s25 = scalar_lea.vmem %s1025_s1, %s748_s22 }
   0xf   : > { %263 = sbr.rel (%p749_p6) target bundleno = 22 (0x16), region = 36 }
  0x14   : > { %v920_v0 = vmov 0.0  }
  0x15   : > { %264 = vst [vmem:[#allocation2] sm:$0xff] %v920_v0 }
  0x16 PF: > { %v860_v1 = vld [vmem:[%s971_s25 + $0x78] sm:$0xff]   ;;  %v864_v5 = vld [vmem:[%s971_s25 + $0x70] sm:$0xff]   ;;  %v868_v9 = vld [vmem:[%s971_s25 + $0x68] sm:$0xff]   ;;  %p786_p7 = scmp.ne.s32.totalorder %s910_s12, 1 }
  0x17   : > { %v861_v2 = vld [vmem:[%s971_s25 + $0xf8] sm:$0xff]   ;;  %791 = vmatprep.subr.bf16.mxu0 %v860_v1  ;;  %v865_v6 = vld [vmem:[%s971_s25 + $0xf0] sm:$0xff]   ;;  %v869_v10 = vld [vmem:[%s971_s25 + $0xe8] sm:$0xff]  }
  0x18   : > { %v862_v3 = vld [vmem:[%s971_s25 + $0x38] sm:$0xff]   ;;  %813 = vmatprep.subr.bf16.mxu1 %v861_v2  ;;  %v866_v7 = vld [vmem:[%s971_s25 + $0x30] sm:$0xff]   ;;  %v870_v11 = vld [vmem:[%s971_s25 + $0x28] sm:$0xff]  }
  0x19   : > { %v863_v4 = vld [vmem:[%s971_s25 + $0xb8] sm:$0xff]   ;;  %792 = vmatpush3.bf16.msra.mxu0 %v862_v3  ;;  %v867_v8 = vld [vmem:[%s971_s25 + $0xb0] sm:$0xff]   ;;  %v871_v12 = vld [vmem:[%s971_s25 + $0xa8] sm:$0xff]  }
  0x1a   : > { %814 = vmatpush3.bf16.msra.mxu1 %v863_v4  ;;  %793 = vmatprep.subr.bf16.mxu0 %v864_v5  ;;  %v872_v13 = vld [vmem:[%s971_s25 + $0x60] sm:$0xff]   ;;  %v876_v17 = vld [vmem:[%s971_s25 + $0x58] sm:$0xff]   ;;  %v880_v21 = vld [vmem:[%s971_s25 + $0x50] sm:$0xff]  }
  0x1b   : > { %815 = vmatprep.subr.bf16.mxu1 %v865_v6  ;;  %v873_v14 = vld [vmem:[%s971_s25 + $0xe0] sm:$0xff]   ;;  %v877_v18 = vld [vmem:[%s971_s25 + $0xd8] sm:$0xff]   ;;  %v881_v22 = vld [vmem:[%s971_s25 + $0xd0] sm:$0xff]  }
  0x1c   : > { %v874_v15 = vld [vmem:[%s971_s25 + $0x20] sm:$0xff]   ;;  %v878_v19 = vld [vmem:[%s971_s25 + $0x18] sm:$0xff]   ;;  %v882_v23 = vld [vmem:[%s971_s25 + $0x10] sm:$0xff]  }
  0x1d   : > { %794 = vmatpush3.bf16.msra.mxu0 %v866_v7  ;;  %v875_v16 = vld [vmem:[%s971_s25 + $0xa0] sm:$0xff]   ;;  %v879_v20 = vld [vmem:[%s971_s25 + $0x98] sm:$0xff]   ;;  %v883_v24 = vld [vmem:[%s971_s25 + $0x90] sm:$0xff]  }
  0x1e   : > { %816 = vmatpush3.bf16.msra.mxu1 %v867_v8  ;;  %795 = vmatprep.subr.bf16.mxu0 %v868_v9  ;;  %v884_v25 = vld [vmem:[%s971_s25 + $0x48] sm:$0xff]   ;;  %v888_v29 = vld [vmem:[%s971_s25 + $0x40] sm:$0xff]  }
  0x1f   : > { %817 = vmatprep.subr.bf16.mxu1 %v869_v10  ;;  %v885_v26 = vld [vmem:[%s971_s25 + $0xc8] sm:$0xff]   ;;  %v889_v30 = vld [vmem:[%s971_s25 + $0xc0] sm:$0xff]  }
  0x20   : > { %v886_v27 = vld [vmem:[%s971_s25 + $0x8] sm:$0xff]   ;;  %v890_v31 = vld [vmem:[%s971_s25] sm:$0xff]  }
  0x21   : > { %796 = vmatpush3.bf16.msra.mxu0 %v870_v11  ;;  %v887_v28 = vld [vmem:[%s971_s25 + $0x88] sm:$0xff]   ;;  %v891_v32 = vld [vmem:[%s971_s25 + $0x80] sm:$0xff]  }
  0x22   : > { %818 = vmatpush3.bf16.msra.mxu1 %v871_v12  ;;  %797 = vmatprep.subr.bf16.mxu0 %v872_v13  ;;  %v266_v33 = vld [vmem:[%s966_s21] sm:$0xff]  ;;  %v267_v34 = vld [vmem:[%s966_s21 + $0x8] sm:$0xff] }
  0x23   : > { %819 = vmatprep.subr.bf16.mxu1 %v873_v14  ;;  %v750_v35 = vcombine.low %v266_v33, %v266_v33  ;;  %v751_v36 = vcombine.high %v266_v33, %v266_v33  ;;  %v752_v37 = vcombine.low %v267_v34, %v267_v34  ;;  %v753_v38 = vcombine.high %v267_v34, %v267_v34  ;;  %v265_v45 = vld [vmem:[#allocation2] sm:$0xff] }
  0x25   : > { %798 = vmatpush3.bf16.msra.mxu0 %v874_v15  ;;  %570 = vmatprep.mubr.bf16.mxu0 %v751_v36 }
  0x26   : > { %820 = vmatpush3.bf16.msra.mxu1 %v875_v16  ;;  %799 = vmatprep.subr.bf16.mxu0 %v876_v17 }
  0x27   : > { %821 = vmatprep.subr.bf16.mxu1 %v877_v18  ;;  %610 = vmatprep.mubr.bf16.mxu1 %v753_v38 }
  0x29   : > { %800 = vmatpush3.bf16.msra.mxu0 %v878_v19 }
  0x2a   : > { %822 = vmatpush3.bf16.msra.mxu1 %v879_v20  ;;  %801 = vmatprep.subr.bf16.mxu0 %v880_v21 }
  0x2b   : > { %823 = vmatprep.subr.bf16.mxu1 %v881_v22 }
  0x2d   : > { %802 = vmatpush3.bf16.msra.mxu0 %v882_v23 }
  0x2e   : > { %824 = vmatpush3.bf16.msra.mxu1 %v883_v24  ;;  %803 = vmatprep.subr.bf16.mxu0 %v884_v25 }
  0x2f   : > { %825 = vmatprep.subr.bf16.mxu1 %v885_v26 }
  0x31   : > { %804 = vmatpush3.bf16.msra.mxu0 %v886_v27 }
  0x32   : > { %826 = vmatpush3.bf16.msra.mxu1 %v887_v28  ;;  %805 = vmatprep.subr.bf16.mxu0 %v888_v29 }
  0x33   : > { %827 = vmatprep.subr.bf16.mxu1 %v889_v30 }
  0x35   : > { %806 = vmatpush3.bf16.msra.mxu0 %v890_v31 }
  0x36   : > { %828 = vmatpush3.bf16.msra.mxu1 %v891_v32 }
  0x38   : > { %571 = vmatmul.mubr.bf16.vlgmr.msra.gmra.mxu0 %v750_v35 }
  0x39   : > { %611 = vmatmul.mubr.bf16.vlgmr.msra.gmra.mxu1 %v752_v37 }
  0xf8   : > { %v807_v39 = vpop.f32.mrf.mxu0 }
  0xf9   : > { %v829_v40 = vpop.f32.mrf.mxu1 }
  0xfa   : > { %v808_v41 = vpop.f32.mrf.mxu0 }
  0xfb   : > { %v830_v42 = vpop.f32.mrf.mxu1  ;;  %v809_v43 = vadd.f32 %v808_v41, %v807_v39 }
  0xfc   : > { %v831_v44 = vadd.f32 %v830_v42, %v829_v40  ;;  %v810_v46 = vpop.f32.mrf.mxu0 }
  0xfd   : > { %v832_v47 = vpop.f32.mrf.mxu1 }
  0xfe   : > { %v613_v48 = vadd.f32 %v831_v44, %v809_v43  ;;  %v811_v49 = vpop.f32.mrf.mxu0  ;;  %623 = sbr.rel (%p786_p7) target bundleno = 271 (0x10f), region = 40 }
  0xff   : > { %v833_v50 = vpop.f32.mrf.mxu1 }
 0x100   : > { %v618_v51 = vadd.f32 %v613_v48, %v265_v45 }
 0x102   : > { %619 = vst [vmem:[#allocation2] sm:$0xff] %v618_v51 }
 0x103   : > { %v787_v53 = vld [vmem:[%s1026_s2] ss:$0 sm:$0xff] }
 0x109   : > { %v624_v52 = vld [vmem:[#allocation2] sm:$0xff] }
 0x10a   : > { %v632_v54 = vadd.f32 %v787_v53, %v624_v52 }
 0x10c   : > { %v633_v55 = vmax.f32 %v632_v54, 0.0 }
 0x10e   : > { %634 = vst [vmem:[%s1027_s3] sm:$0xff] %v633_v55 }
 0x10f PF: > { %s13_s14 = sadd.s32 1, %s918_s14   ;;  %s1028_s12 = smov %s914_s13 }
 0x110   : > { %p10_p8 = scmp.ge.s32.totalorder %s13_s14, 4   ;;  %s1029_s13 = smov %s1031_s15 }
 0x112   :  { %12 = sbr.rel (!%p10_p8) target bundleno = 2 (0x2), region = 76 }

</bundles_post_ra>
